<compile_context>
chip_gen: v7x
topology: tpu7x:2x2x1
jax: 0.10.0
libtpu: 0.0.40
codegen_flags: <defaults>
</compile_context>

<pallas_src>
import functools

import jax
import jax.numpy as jnp
from jax.experimental import pallas as pl
from jax.experimental.pallas import tpu as pltpu


def _round_up(v, m):
    return (v + m - 1) // m * m


# Cached capability flag: single-buffered (Buffered(1)) grid-invariant weight
# BlockSpecs.  If the installed Pallas/Mosaic rejects it we fall back once and
# remember.
_SINGLE_BUFFER_WEIGHTS_OK = True


def adaln_kernel(x_ref, c_ref,
                 w1_ref, b1_ref,          # fused gamma|beta first-layer weight/bias
                 w2g_ref, b2g_ref,        # gamma-net second layer
                 w2b_ref, b2b_ref,        # beta-net second layer
                 o_ref,
                 *, d_valid, h_pad):
    x = x_ref[...].astype(jnp.float32)    # [tm, Dp]; padded lanes (if any) are zero

    # ---- conditioning MLPs (MXU work; operands in w1_ref.dtype, f32 accum) ---
    mm_dtype = w1_ref.dtype
    c_mm = c_ref[...].astype(mm_dtype)
    h = jnp.dot(c_mm, w1_ref[...], preferred_element_type=jnp.float32)
    h = h + b1_ref[...].astype(jnp.float32)
    h = h * jax.nn.sigmoid(h)                                   # SiLU, f32 on EUP/VPU

    hg = h[:, :h_pad].astype(mm_dtype)                          # lane-aligned halves
    hb = h[:, h_pad:].astype(mm_dtype)

    gamma = jnp.dot(hg, w2g_ref[...], preferred_element_type=jnp.float32)
    gamma = gamma + b2g_ref[...].astype(jnp.float32)
    beta = jnp.dot(hb, w2b_ref[...], preferred_element_type=jnp.float32)
    beta = beta + b2b_ref[...].astype(jnp.float32)

    # ---- layer-norm-style normalization over the *valid* feature lanes -------
    # Padded lanes of x are zero, so a plain row-sum is the true row-sum.
    mean = jnp.sum(x, axis=-1, keepdims=True) * (1.0 / d_valid)
    if d_valid != x.shape[-1]:
        # Only needed when D was padded up to a lane multiple.
        lane = jax.lax.broadcasted_iota(jnp.int32, x.shape, 1)
        xm = jnp.where(lane < d_valid, x - mean, 0.0)
    else:
        xm = x - mean
    # torch.std default is unbiased (divides by D-1); eps is added to std, not
    # to the variance -- matches the PyTorch module exactly.
    var = jnp.sum(xm * xm, axis=-1, keepdims=True) * (1.0 / (d_valid - 1))
    inv = pl.reciprocal(jnp.sqrt(var) + 1e-6, approx=True)      # EUP slot, ~free

    o_ref[...] = (gamma * (xm * inv) + beta).astype(o_ref.dtype)


def prepare_params(params, *, compute_dtype=jnp.bfloat16):
    """One-time fusion + lane padding of the PyTorch-layout weights ([in, out]).

    Hoisted out of adaln_forward so per-call overhead is only the row tiling.
    """
    D, H = params["w1g"].shape
    Dp, Hp = _round_up(D, 128), _round_up(H, 128)
    f32 = jnp.float32

    # Fused + padded layer-1 weight [Dp, 2*Hp]: gamma half, then beta half.
    w1 = jnp.zeros((Dp, 2 * Hp), f32)
    w1 = w1.at[:D, :H].set(params["w1g"].astype(f32))
    w1 = w1.at[:D, Hp:Hp + H].set(params["w1b"].astype(f32))
    b1 = jnp.zeros((1, 2 * Hp), f32)
    b1 = b1.at[:, :H].set(params["b1g"].astype(f32).reshape(1, H))
    b1 = b1.at[:, Hp:Hp + H].set(params["b1b"].astype(f32).reshape(1, H))

    w2g = jnp.zeros((Hp, Dp), f32).at[:H, :D].set(params["w2g"].astype(f32))
    w2b = jnp.zeros((Hp, Dp), f32).at[:H, :D].set(params["w2b"].astype(f32))
    b2g = jnp.zeros((1, Dp), f32).at[:, :D].set(params["b2g"].astype(f32).reshape(1, D))
    b2b = jnp.zeros((1, Dp), f32).at[:, :D].set(params["b2b"].astype(f32).reshape(1, D))

    cd = jnp.dtype(compute_dtype)
    return {
        "fused": True, "D": D, "H": H, "Dp": Dp, "Hp": Hp,
        "w1": w1.astype(cd), "b1": b1,           # biases stay f32 (added post-MXU)
        "w2g": w2g.astype(cd), "b2g": b2g,
        "w2b": w2b.astype(cd), "b2b": b2b,
    }


def adaln_forward(x, c, params, *, tm=512, compute_dtype=jnp.bfloat16):
    """x, c: [..., cond_dim]; params: raw PyTorch-layout dict or prepare_params() output."""
    if "fused" not in params:
        params = prepare_params(params, compute_dtype=compute_dtype)

    D, H = params["D"], params["H"]
    Dp, Hp = params["Dp"], params["Hp"]

    orig_shape = x.shape
    assert orig_shape[-1] == D
    assert c.shape == orig_shape
    assert D > 1, "unbiased std needs at least 2 features"

    x2 = x.reshape(-1, D)
    c2 = c.reshape(-1, D)
    N = x2.shape[0]

    # Row tile: as large as requested, but never larger than the (sublane-
    # aligned) row count.
    tm_eff = min(_round_up(tm, 8), _round_up(N, 8))
    # Guarantee >= 2 grid steps so the ("parallel",) axis can span both v7x
    # TensorCores (harmless single extra step on single-TC v5e/v6e).
    if _round_up(N, tm_eff) // tm_eff < 2 and tm_eff > 8:
        tm_eff = _round_up(max(8, tm_eff // 2), 8)
    Np = _round_up(N, tm_eff)

    # Pad x/c only when actually needed; skip the output slice for aligned shapes.
    needs_pad = (Dp != D) or (Np != N)
    if needs_pad:
        xp = jnp.zeros((Np, Dp), x2.dtype).at[:N, :D].set(x2)
        cp = jnp.zeros((Np, Dp), c2.dtype).at[:N, :D].set(c2)
    else:
        xp, cp = x2, c2

    # Per-generation VMEM cap: 80% of physical (≈51 MiB on v7x, ≈102 MiB on v5e/v6e).
    try:
        vmem_cap = int(getattr(pltpu.get_tpu_info(), "vmem_capacity_bytes", 128 << 20))
    except Exception:
        vmem_cap = 128 << 20
    vmem_budget = int(vmem_cap * 0.8)

    weight_bytes = sum(int(params[k].size) * params[k].dtype.itemsize
                       for k in ("w1", "b1", "w2g", "b2g", "w2b", "b2b"))
    tile_bytes = tm_eff * Dp * (xp.dtype.itemsize + cp.dtype.itemsize
                                + jnp.dtype(x.dtype).itemsize)
    h_bytes = tm_eff * 2 * Hp * 4          # live f32 layer-1 intermediate
    vmem_needed = 2 * weight_bytes + 2 * tile_bytes + h_bytes + (8 << 20)
    vmem_limit = int(min(vmem_budget, max(32 << 20, vmem_needed)))

    kernel = functools.partial(adaln_kernel, d_valid=D, h_pad=Hp)
    row_spec = pl.BlockSpec((tm_eff, Dp), lambda i: (i, 0))
    out_shape = jax.ShapeDtypeStruct((Np, Dp), x.dtype)

    def run(weight_pipeline_mode):
        def full(shape):
            # Grid-invariant weight/bias blocks; single-buffer when supported.
            return pl.BlockSpec(shape, lambda i: (0, 0),
                                pipeline_mode=weight_pipeline_mode)

        return pl.pallas_call(
            kernel,
            out_shape=out_shape,
            grid_spec=pltpu.PrefetchScalarGridSpec(
                num_scalar_prefetch=0,
                grid=(Np // tm_eff,),
                in_specs=[
                    row_spec,                       # x tile
                    row_spec,                       # c tile
                    full((Dp, 2 * Hp)),             # fused layer-1 weight
                    full((1, 2 * Hp)),              # fused layer-1 bias
                    full((Hp, Dp)), full((1, Dp)),  # gamma layer 2
                    full((Hp, Dp)), full((1, Dp)),  # beta layer 2
                ],
                out_specs=row_spec,
            ),
            compiler_params=pltpu.CompilerParams(
                dimension_semantics=("parallel",),   # row tiles split across TCs
                vmem_limit_bytes=vmem_limit,
            ),
        )(xp, cp, params["w1"], params["b1"], params["w2g"], params["b2g"],
          params["w2b"], params["b2b"])

    global _SINGLE_BUFFER_WEIGHTS_OK
    out = None
    if _SINGLE_BUFFER_WEIGHTS_OK:
        try:
            out = run(pl.Buffered(1))
        except Exception:
            _SINGLE_BUFFER_WEIGHTS_OK = False   # fall back to default buffering
    if out is None:
        out = run(None)

    if needs_pad:
        out = out[:N, :D]
    return out.reshape(orig_shape)


def init_params(key, cond_dim, hidden_dim, dtype=jnp.float32):
    ks = jax.random.split(key, 8)
    s1 = 1.0 / jnp.sqrt(cond_dim)
    s2 = 1.0 / jnp.sqrt(hidden_dim)
    return {
        "w1g": jax.random.uniform(ks[0], (cond_dim, hidden_dim), dtype, -s1, s1),
        "b1g": jax.random.uniform(ks[1], (1, hidden_dim), dtype, -s1, s1),
        "w2g": jax.random.uniform(ks[2], (hidden_dim, cond_dim), dtype, -s2, s2),
        "b2g": jax.random.uniform(ks[3], (1, cond_dim), dtype, -s2, s2),
        "w1b": jax.random.uniform(ks[4], (cond_dim, hidden_dim), dtype, -s1, s1),
        "b1b": jax.random.uniform(ks[5], (1, hidden_dim), dtype, -s1, s1),
        "w2b": jax.random.uniform(ks[6], (hidden_dim, cond_dim), dtype, -s2, s2),
        "b2b": jax.random.uniform(ks[7], (1, cond_dim), dtype, -s2, s2),
    }


def adaln_reference(x, c, p):
    """Pure-JAX reference mirroring the PyTorch forward (f32 everywhere)."""
    def mlp(inp, w1, b1, w2, b2):
        h = inp @ w1 + b1
        h = h * jax.nn.sigmoid(h)
        return h @ w2 + b2
    gamma = mlp(c, p["w1g"], p["b1g"], p["w2g"], p["b2g"])
    beta = mlp(c, p["w1b"], p["b1b"], p["w2b"], p["b2b"])
    mean = x.mean(-1, keepdims=True)
    std = jnp.sqrt(((x - mean) ** 2).sum(-1, keepdims=True) / (x.shape[-1] - 1))
    return gamma * (x - mean) / (std + 1e-6) + beta


if __name__ == "__main__":
    batch, seq = 2, 8
    cond_dim, hidden_dim = 16, 32

    key = jax.random.PRNGKey(0)
    kx, kc, kp = jax.random.split(key, 3)

    x = jax.random.normal(kx, (batch, seq, cond_dim), jnp.float32)
    c = jax.random.normal(kc, (batch, seq, cond_dim), jnp.float32)
    params = init_params(kp, cond_dim, hidden_dim)
    ref = adaln_reference(x, c, params)

    # Default path: bf16 MXU operands (recommended on v5e/v6e/v7x), f32 accum/norm.
    prepared_bf16 = prepare_params(params, compute_dtype=jnp.bfloat16)
    out = jax.block_until_ready(adaln_forward(x, c, prepared_bf16))
    assert out.shape == x.shape
    assert jnp.allclose(out, ref, atol=3e-2, rtol=3e-2), (
        float(jnp.max(jnp.abs(out - ref))))

    # f32 MXU operands: tight parity check against the reference.
    prepared_f32 = prepare_params(params, compute_dtype=jnp.float32)
    out32 = jax.block_until_ready(adaln_forward(x, c, prepared_f32))
    assert out32.shape == x.shape
    assert jnp.allclose(out32, ref, atol=2e-3, rtol=2e-3), (
        float(jnp.max(jnp.abs(out32 - ref))))

    print("KERNEL_OK")
</pallas_src>

<mosaic_0001>
module attributes {stable_mosaic.version = 11 : i64} {
  func.func @adaln_kernel(%arg0: i32, %arg1: memref<8x128xf32, #tpu.memory_space<vmem>>, %arg2: memref<8x128xf32, #tpu.memory_space<vmem>>, %arg3: memref<128x256xbf16, #tpu.memory_space<vmem>>, %arg4: memref<1x256xf32, #tpu.memory_space<vmem>>, %arg5: memref<128x128xbf16, #tpu.memory_space<vmem>>, %arg6: memref<1x128xf32, #tpu.memory_space<vmem>>, %arg7: memref<128x128xbf16, #tpu.memory_space<vmem>>, %arg8: memref<1x128xf32, #tpu.memory_space<vmem>>, %arg9: memref<8x128xf32, #tpu.memory_space<vmem>>) attributes {dimension_semantics = [#tpu.dimension_semantics<parallel>], iteration_bounds = array<i64: 2>, scalar_prefetch = 0 : i64, scratch_operands = 0 : i64, tpu.core_type = #tpu.core_type<tc>, window_params = [{transform_indices = @transform_0, window_bounds = array<i64: 8, 128>}, {transform_indices = @transform_1, window_bounds = array<i64: 8, 128>}, {pipeline_mode = #tpu.pipeline_mode<synchronous>, transform_indices = @transform_2, window_bounds = array<i64: 128, 256>}, {pipeline_mode = #tpu.pipeline_mode<synchronous>, transform_indices = @transform_3, window_bounds = array<i64: 1, 256>}, {pipeline_mode = #tpu.pipeline_mode<synchronous>, transform_indices = @transform_4, window_bounds = array<i64: 128, 128>}, {pipeline_mode = #tpu.pipeline_mode<synchronous>, transform_indices = @transform_5, window_bounds = array<i64: 1, 128>}, {pipeline_mode = #tpu.pipeline_mode<synchronous>, transform_indices = @transform_6, window_bounds = array<i64: 128, 128>}, {pipeline_mode = #tpu.pipeline_mode<synchronous>, transform_indices = @transform_7, window_bounds = array<i64: 1, 128>}, {transform_indices = @transform_8, window_bounds = array<i64: 8, 128>}]} {
    %c0 = arith.constant 0 : index
    %c0_0 = arith.constant 0 : index
    %0 = vector.load %arg1[%c0, %c0_0] : memref<8x128xf32, #tpu.memory_space<vmem>>, vector<8x128xf32>
    %c0_1 = arith.constant 0 : index
    %c0_2 = arith.constant 0 : index
    %1 = vector.load %arg2[%c0_1, %c0_2] : memref<8x128xf32, #tpu.memory_space<vmem>>, vector<8x128xf32>
    %2 = arith.truncf %1 : vector<8x128xf32> to vector<8x128xbf16>
    %c0_3 = arith.constant 0 : index
    %c0_4 = arith.constant 0 : index
    %3 = vector.load %arg3[%c0_3, %c0_4] : memref<128x256xbf16, #tpu.memory_space<vmem>>, vector<128x256xbf16>
    %cst = arith.constant dense<0.000000e+00> : vector<8x256xf32>
    %4 = tpu.matmul %2, %3, %cst {dimension_numbers = #tpu.dot_dimension_numbers<[1], [0], [0], [1], [0, 0, 1, 1], [], []>} : vector<8x128xbf16>, vector<128x256xbf16>, vector<8x256xf32> -> vector<8x256xf32>
    %c0_5 = arith.constant 0 : index
    %c0_6 = arith.constant 0 : index
    %5 = vector.load %arg4[%c0_5, %c0_6] : memref<1x256xf32, #tpu.memory_space<vmem>>, vector<1x256xf32>
    %6 = vector.broadcast %5 : vector<1x256xf32> to vector<8x256xf32>
    %7 = arith.addf %4, %6 : vector<8x256xf32>
    %8 = arith.negf %7 : vector<8x256xf32>
    %9 = math.exp %8 : vector<8x256xf32>
    %cst_7 = arith.constant 1.000000e+00 : f32
    %10 = vector.broadcast %cst_7 : f32 to vector<8x256xf32>
    %11 = arith.addf %10, %9 : vector<8x256xf32>
    %12 = arith.divf %10, %11 : vector<8x256xf32>
    %13 = arith.mulf %7, %12 : vector<8x256xf32>
    %14 = vector.extract_strided_slice %13 {offsets = [0, 0], sizes = [8, 128], strides = [1, 1]} : vector<8x256xf32> to vector<8x128xf32>
    %15 = arith.truncf %14 : vector<8x128xf32> to vector<8x128xbf16>
    %16 = vector.extract_strided_slice %13 {offsets = [0, 128], sizes = [8, 128], strides = [1, 1]} : vector<8x256xf32> to vector<8x128xf32>
    %17 = arith.truncf %16 : vector<8x128xf32> to vector<8x128xbf16>
    %c0_8 = arith.constant 0 : index
    %c0_9 = arith.constant 0 : index
    %18 = vector.load %arg5[%c0_8, %c0_9] : memref<128x128xbf16, #tpu.memory_space<vmem>>, vector<128x128xbf16>
    %cst_10 = arith.constant dense<0.000000e+00> : vector<8x128xf32>
    %19 = tpu.matmul %15, %18, %cst_10 {dimension_numbers = #tpu.dot_dimension_numbers<[1], [0], [0], [1], [0, 0, 1, 1], [], []>} : vector<8x128xbf16>, vector<128x128xbf16>, vector<8x128xf32> -> vector<8x128xf32>
    %c0_11 = arith.constant 0 : index
    %c0_12 = arith.constant 0 : index
    %20 = vector.load %arg6[%c0_11, %c0_12] : memref<1x128xf32, #tpu.memory_space<vmem>>, vector<1x128xf32>
    %21 = vector.broadcast %20 : vector<1x128xf32> to vector<8x128xf32>
    %22 = arith.addf %19, %21 : vector<8x128xf32>
    %c0_13 = arith.constant 0 : index
    %c0_14 = arith.constant 0 : index
    %23 = vector.load %arg7[%c0_13, %c0_14] : memref<128x128xbf16, #tpu.memory_space<vmem>>, vector<128x128xbf16>
    %cst_15 = arith.constant dense<0.000000e+00> : vector<8x128xf32>
    %24 = tpu.matmul %17, %23, %cst_15 {dimension_numbers = #tpu.dot_dimension_numbers<[1], [0], [0], [1], [0, 0, 1, 1], [], []>} : vector<8x128xbf16>, vector<128x128xbf16>, vector<8x128xf32> -> vector<8x128xf32>
    %c0_16 = arith.constant 0 : index
    %c0_17 = arith.constant 0 : index
    %25 = vector.load %arg8[%c0_16, %c0_17] : memref<1x128xf32, #tpu.memory_space<vmem>>, vector<1x128xf32>
    %26 = vector.broadcast %25 : vector<1x128xf32> to vector<8x128xf32>
    %27 = arith.addf %24, %26 : vector<8x128xf32>
    %cst_18 = arith.constant dense<0.000000e+00> : vector<8xf32>
    %28 = vector.multi_reduction <add>, %0, %cst_18 [1] : vector<8x128xf32> to vector<8xf32>
    %29 = vector.shape_cast %28 : vector<8xf32> to vector<8x1xf32>
    %cst_19 = arith.constant 6.250000e-02 : f32
    %30 = vector.broadcast %cst_19 : f32 to vector<8x1xf32>
    %31 = arith.mulf %29, %30 : vector<8x1xf32>
    %32 = tpu.iota {dimensions = array<i32: 1>} : vector<8x128xi32>
    %c16_i32 = arith.constant 16 : i32
    %33 = vector.broadcast %c16_i32 : i32 to vector<8x128xi32>
    %34 = arith.cmpi slt, %32, %33 : vector<8x128xi32>
    %35 = vector.broadcast %31 : vector<8x1xf32> to vector<8x128xf32>
    %36 = arith.subf %0, %35 : vector<8x128xf32>
    %cst_20 = arith.constant 0.000000e+00 : f32
    %37 = vector.broadcast %cst_20 : f32 to vector<8x128xf32>
    %38 = arith.select %34, %36, %37 : vector<8x128xi1>, vector<8x128xf32>
    %39 = arith.mulf %38, %38 : vector<8x128xf32>
    %cst_21 = arith.constant dense<0.000000e+00> : vector<8xf32>
    %40 = vector.multi_reduction <add>, %39, %cst_21 [1] : vector<8x128xf32> to vector<8xf32>
    %41 = vector.shape_cast %40 : vector<8xf32> to vector<8x1xf32>
    %cst_22 = arith.constant 0.0666666701 : f32
    %42 = vector.broadcast %cst_22 : f32 to vector<8x1xf32>
    %43 = arith.mulf %41, %42 : vector<8x1xf32>
    %44 = math.sqrt %43 : vector<8x1xf32>
    %cst_23 = arith.constant 9.99999997E-7 : f32
    %45 = vector.broadcast %cst_23 : f32 to vector<8x1xf32>
    %46 = arith.addf %44, %45 : vector<8x1xf32>
    %47 = tpu.reciprocal %46 {approx = true} : vector<8x1xf32> -> vector<8x1xf32>
    %48 = vector.broadcast %47 : vector<8x1xf32> to vector<8x128xf32>
    %49 = arith.mulf %38, %48 : vector<8x128xf32>
    %50 = arith.mulf %22, %49 : vector<8x128xf32>
    %51 = arith.addf %50, %27 : vector<8x128xf32>
    %c0_24 = arith.constant 0 : index
    %c0_25 = arith.constant 0 : index
    %52 = vector.load %arg9[%c0_24, %c0_25] : memref<8x128xf32, #tpu.memory_space<vmem>>, vector<8x128xf32>
    tpu.vector_store %arg9[%c0_24, %c0_25], %51 {strides = array<i32>} : memref<8x128xf32, #tpu.memory_space<vmem>>, vector<8x128xf32>,
    return
  }
  func.func @transform_0(%arg0: i32) -> (i32, i32) {
    %c0_i32 = arith.constant 0 : i32
    %c0_i32_0 = arith.constant 0 : i32
    return %arg0, %c0_i32 : i32, i32
  }
  func.func @transform_1(%arg0: i32) -> (i32, i32) {
    %c0_i32 = arith.constant 0 : i32
    %c0_i32_0 = arith.constant 0 : i32
    return %arg0, %c0_i32 : i32, i32
  }
  func.func @transform_2(%arg0: i32) -> (i32, i32) {
    %c0_i32 = arith.constant 0 : i32
    %c0_i32_0 = arith.constant 0 : i32
    %c0_i32_1 = arith.constant 0 : i32
    return %c0_i32, %c0_i32_0 : i32, i32
  }
  func.func @transform_3(%arg0: i32) -> (i32, i32) {
    %c0_i32 = arith.constant 0 : i32
    %c0_i32_0 = arith.constant 0 : i32
    %c0_i32_1 = arith.constant 0 : i32
    return %c0_i32, %c0_i32_0 : i32, i32
  }
  func.func @transform_4(%arg0: i32) -> (i32, i32) {
    %c0_i32 = arith.constant 0 : i32
    %c0_i32_0 = arith.constant 0 : i32
    %c0_i32_1 = arith.constant 0 : i32
    return %c0_i32, %c0_i32_0 : i32, i32
  }
  func.func @transform_5(%arg0: i32) -> (i32, i32) {
    %c0_i32 = arith.constant 0 : i32
    %c0_i32_0 = arith.constant 0 : i32
    %c0_i32_1 = arith.constant 0 : i32
    return %c0_i32, %c0_i32_0 : i32, i32
  }
  func.func @transform_6(%arg0: i32) -> (i32, i32) {
    %c0_i32 = arith.constant 0 : i32
    %c0_i32_0 = arith.constant 0 : i32
    %c0_i32_1 = arith.constant 0 : i32
    return %c0_i32, %c0_i32_0 : i32, i32
  }
  func.func @transform_7(%arg0: i32) -> (i32, i32) {
    %c0_i32 = arith.constant 0 : i32
    %c0_i32_0 = arith.constant 0 : i32
    %c0_i32_1 = arith.constant 0 : i32
    return %c0_i32, %c0_i32_0 : i32, i32
  }
  func.func @transform_8(%arg0: i32) -> (i32, i32) {
    %c0_i32 = arith.constant 0 : i32
    %c0_i32_0 = arith.constant 0 : i32
    return %arg0, %c0_i32 : i32, i32
  }
}

module attributes {stable_mosaic.version = 11 : i64} {
  func.func @adaln_kernel(%arg0: i32, %arg1: memref<8x128xf32, #tpu.memory_space<vmem>>, %arg2: memref<8x128xf32, #tpu.memory_space<vmem>>, %arg3: memref<128x256xbf16, #tpu.memory_space<vmem>>, %arg4: memref<1x256xf32, #tpu.memory_space<vmem>>, %arg5: memref<128x128xbf16, #tpu.memory_space<vmem>>, %arg6: memref<1x128xf32, #tpu.memory_space<vmem>>, %arg7: memref<128x128xbf16, #tpu.memory_space<vmem>>, %arg8: memref<1x128xf32, #tpu.memory_space<vmem>>, %arg9: memref<8x128xf32, #tpu.memory_space<vmem>>) attributes {dimension_semantics = [#tpu.dimension_semantics<parallel>], iteration_bounds = array<i64: 2>, scalar_prefetch = 0 : i64, scratch_operands = 0 : i64, tpu.core_type = #tpu.core_type<tc>, window_params = [{transform_indices = @transform_0, window_bounds = array<i64: 8, 128>}, {transform_indices = @transform_1, window_bounds = array<i64: 8, 128>}, {pipeline_mode = #tpu.pipeline_mode<synchronous>, transform_indices = @transform_2, window_bounds = array<i64: 128, 256>}, {pipeline_mode = #tpu.pipeline_mode<synchronous>, transform_indices = @transform_3, window_bounds = array<i64: 1, 256>}, {pipeline_mode = #tpu.pipeline_mode<synchronous>, transform_indices = @transform_4, window_bounds = array<i64: 128, 128>}, {pipeline_mode = #tpu.pipeline_mode<synchronous>, transform_indices = @transform_5, window_bounds = array<i64: 1, 128>}, {pipeline_mode = #tpu.pipeline_mode<synchronous>, transform_indices = @transform_6, window_bounds = array<i64: 128, 128>}, {pipeline_mode = #tpu.pipeline_mode<synchronous>, transform_indices = @transform_7, window_bounds = array<i64: 1, 128>}, {transform_indices = @transform_8, window_bounds = array<i64: 8, 128>}]} {
    %c0 = arith.constant 0 : index
    %c0_0 = arith.constant 0 : index
    %0 = vector.load %arg1[%c0, %c0_0] : memref<8x128xf32, #tpu.memory_space<vmem>>, vector<8x128xf32>
    %c0_1 = arith.constant 0 : index
    %c0_2 = arith.constant 0 : index
    %1 = vector.load %arg2[%c0_1, %c0_2] : memref<8x128xf32, #tpu.memory_space<vmem>>, vector<8x128xf32>
    %2 = arith.truncf %1 : vector<8x128xf32> to vector<8x128xbf16>
    %c0_3 = arith.constant 0 : index
    %c0_4 = arith.constant 0 : index
    %3 = vector.load %arg3[%c0_3, %c0_4] : memref<128x256xbf16, #tpu.memory_space<vmem>>, vector<128x256xbf16>
    %cst = arith.constant dense<0.000000e+00> : vector<8x256xf32>
    %4 = tpu.matmul %2, %3, %cst {dimension_numbers = #tpu.dot_dimension_numbers<[1], [0], [0], [1], [0, 0, 1, 1], [], []>} : vector<8x128xbf16>, vector<128x256xbf16>, vector<8x256xf32> -> vector<8x256xf32>
    %c0_5 = arith.constant 0 : index
    %c0_6 = arith.constant 0 : index
    %5 = vector.load %arg4[%c0_5, %c0_6] : memref<1x256xf32, #tpu.memory_space<vmem>>, vector<1x256xf32>
    %6 = vector.broadcast %5 : vector<1x256xf32> to vector<8x256xf32>
    %7 = arith.addf %4, %6 : vector<8x256xf32>
    %8 = arith.negf %7 : vector<8x256xf32>
    %9 = math.exp %8 : vector<8x256xf32>
    %cst_7 = arith.constant 1.000000e+00 : f32
    %10 = vector.broadcast %cst_7 : f32 to vector<8x256xf32>
    %11 = arith.addf %10, %9 : vector<8x256xf32>
    %12 = arith.divf %10, %11 : vector<8x256xf32>
    %13 = arith.mulf %7, %12 : vector<8x256xf32>
    %14 = vector.extract_strided_slice %13 {offsets = [0, 0], sizes = [8, 128], strides = [1, 1]} : vector<8x256xf32> to vector<8x128xf32>
    %15 = arith.truncf %14 : vector<8x128xf32> to vector<8x128xbf16>
    %16 = vector.extract_strided_slice %13 {offsets = [0, 128], sizes = [8, 128], strides = [1, 1]} : vector<8x256xf32> to vector<8x128xf32>
    %17 = arith.truncf %16 : vector<8x128xf32> to vector<8x128xbf16>
    %c0_8 = arith.constant 0 : index
    %c0_9 = arith.constant 0 : index
    %18 = vector.load %arg5[%c0_8, %c0_9] : memref<128x128xbf16, #tpu.memory_space<vmem>>, vector<128x128xbf16>
    %cst_10 = arith.constant dense<0.000000e+00> : vector<8x128xf32>
    %19 = tpu.matmul %15, %18, %cst_10 {dimension_numbers = #tpu.dot_dimension_numbers<[1], [0], [0], [1], [0, 0, 1, 1], [], []>} : vector<8x128xbf16>, vector<128x128xbf16>, vector<8x128xf32> -> vector<8x128xf32>
    %c0_11 = arith.constant 0 : index
    %c0_12 = arith.constant 0 : index
    %20 = vector.load %arg6[%c0_11, %c0_12] : memref<1x128xf32, #tpu.memory_space<vmem>>, vector<1x128xf32>
    %21 = vector.broadcast %20 : vector<1x128xf32> to vector<8x128xf32>
    %22 = arith.addf %19, %21 : vector<8x128xf32>
    %c0_13 = arith.constant 0 : index
    %c0_14 = arith.constant 0 : index
    %23 = vector.load %arg7[%c0_13, %c0_14] : memref<128x128xbf16, #tpu.memory_space<vmem>>, vector<128x128xbf16>
    %cst_15 = arith.constant dense<0.000000e+00> : vector<8x128xf32>
    %24 = tpu.matmul %17, %23, %cst_15 {dimension_numbers = #tpu.dot_dimension_numbers<[1], [0], [0], [1], [0, 0, 1, 1], [], []>} : vector<8x128xbf16>, vector<128x128xbf16>, vector<8x128xf32> -> vector<8x128xf32>
    %c0_16 = arith.constant 0 : index
    %c0_17 = arith.constant 0 : index
    %25 = vector.load %arg8[%c0_16, %c0_17] : memref<1x128xf32, #tpu.memory_space<vmem>>, vector<1x128xf32>
    %26 = vector.broadcast %25 : vector<1x128xf32> to vector<8x128xf32>
    %27 = arith.addf %24, %26 : vector<8x128xf32>
    %cst_18 = arith.constant dense<0.000000e+00> : vector<8xf32>
    %28 = vector.multi_reduction <add>, %0, %cst_18 [1] : vector<8x128xf32> to vector<8xf32>
    %29 = vector.shape_cast %28 : vector<8xf32> to vector<8x1xf32>
    %cst_19 = arith.constant 6.250000e-02 : f32
    %30 = vector.broadcast %cst_19 : f32 to vector<8x1xf32>
    %31 = arith.mulf %29, %30 : vector<8x1xf32>
    %32 = tpu.iota {dimensions = array<i32: 1>} : vector<8x128xi32>
    %c16_i32 = arith.constant 16 : i32
    %33 = vector.broadcast %c16_i32 : i32 to vector<8x128xi32>
    %34 = arith.cmpi slt, %32, %33 : vector<8x128xi32>
    %35 = vector.broadcast %31 : vector<8x1xf32> to vector<8x128xf32>
    %36 = arith.subf %0, %35 : vector<8x128xf32>
    %cst_20 = arith.constant 0.000000e+00 : f32
    %37 = vector.broadcast %cst_20 : f32 to vector<8x128xf32>
    %38 = arith.select %34, %36, %37 : vector<8x128xi1>, vector<8x128xf32>
    %39 = arith.mulf %38, %38 : vector<8x128xf32>
    %cst_21 = arith.constant dense<0.000000e+00> : vector<8xf32>
    %40 = vector.multi_reduction <add>, %39, %cst_21 [1] : vector<8x128xf32> to vector<8xf32>
    %41 = vector.shape_cast %40 : vector<8xf32> to vector<8x1xf32>
    %cst_22 = arith.constant 0.0666666701 : f32
    %42 = vector.broadcast %cst_22 : f32 to vector<8x1xf32>
    %43 = arith.mulf %41, %42 : vector<8x1xf32>
    %44 = math.sqrt %43 : vector<8x1xf32>
    %cst_23 = arith.constant 9.99999997E-7 : f32
    %45 = vector.broadcast %cst_23 : f32 to vector<8x1xf32>
    %46 = arith.addf %44, %45 : vector<8x1xf32>
    %47 = tpu.reciprocal %46 {approx = true} : vector<8x1xf32> -> vector<8x1xf32>
    %48 = vector.broadcast %47 : vector<8x1xf32> to vector<8x128xf32>
    %49 = arith.mulf %38, %48 : vector<8x128xf32>
    %50 = arith.mulf %22, %49 : vector<8x128xf32>
    %51 = arith.addf %50, %27 : vector<8x128xf32>
    %c0_24 = arith.constant 0 : index
    %c0_25 = arith.constant 0 : index
    %52 = vector.load %arg9[%c0_24, %c0_25] : memref<8x128xf32, #tpu.memory_space<vmem>>, vector<8x128xf32>
    tpu.vector_store %arg9[%c0_24, %c0_25], %51 {strides = array<i32>} : memref<8x128xf32, #tpu.memory_space<vmem>>, vector<8x128xf32>,
    return
  }
  func.func @transform_0(%arg0: i32) -> (i32, i32) {
    %c0_i32 = arith.constant 0 : i32
    %c0_i32_0 = arith.constant 0 : i32
    return %arg0, %c0_i32 : i32, i32
  }
  func.func @transform_1(%arg0: i32) -> (i32, i32) {
    %c0_i32 = arith.constant 0 : i32
    %c0_i32_0 = arith.constant 0 : i32
    return %arg0, %c0_i32 : i32, i32
  }
  func.func @transform_2(%arg0: i32) -> (i32, i32) {
    %c0_i32 = arith.constant 0 : i32
    %c0_i32_0 = arith.constant 0 : i32
    %c0_i32_1 = arith.constant 0 : i32
    return %c0_i32, %c0_i32_0 : i32, i32
  }
  func.func @transform_3(%arg0: i32) -> (i32, i32) {
    %c0_i32 = arith.constant 0 : i32
    %c0_i32_0 = arith.constant 0 : i32
    %c0_i32_1 = arith.constant 0 : i32
    return %c0_i32, %c0_i32_0 : i32, i32
  }
  func.func @transform_4(%arg0: i32) -> (i32, i32) {
    %c0_i32 = arith.constant 0 : i32
    %c0_i32_0 = arith.constant 0 : i32
    %c0_i32_1 = arith.constant 0 : i32
    return %c0_i32, %c0_i32_0 : i32, i32
  }
  func.func @transform_5(%arg0: i32) -> (i32, i32) {
    %c0_i32 = arith.constant 0 : i32
    %c0_i32_0 = arith.constant 0 : i32
    %c0_i32_1 = arith.constant 0 : i32
    return %c0_i32, %c0_i32_0 : i32, i32
  }
  func.func @transform_6(%arg0: i32) -> (i32, i32) {
    %c0_i32 = arith.constant 0 : i32
    %c0_i32_0 = arith.constant 0 : i32
    %c0_i32_1 = arith.constant 0 : i32
    return %c0_i32, %c0_i32_0 : i32, i32
  }
  func.func @transform_7(%arg0: i32) -> (i32, i32) {
    %c0_i32 = arith.constant 0 : i32
    %c0_i32_0 = arith.constant 0 : i32
    %c0_i32_1 = arith.constant 0 : i32
    return %c0_i32, %c0_i32_0 : i32, i32
  }
  func.func @transform_8(%arg0: i32) -> (i32, i32) {
    %c0_i32 = arith.constant 0 : i32
    %c0_i32_0 = arith.constant 0 : i32
    return %arg0, %c0_i32 : i32, i32
  }
}

</mosaic_0001>

<bundles_post_ra>
// kernel: tpu_custom_call.1
= control target key start
LH: loop header
LB: loop body
LE: loop exit
PB: predicated region body
PF: predicated region fallthrough
CT: control target
= control target key end

     0   :  { %s1795_s0 = inlined_call_operand.hbm [shape: f32[16,128], index: 0, kind: input, shape index: {}]   ;;  %s1796_s1 = inlined_call_operand.hbm [shape: f32[16,128], index: 1, kind: input, shape index: {}]   ;;  %s1797_s2 = inlined_call_operand.hbm [shape: bf16[128,256], index: 2, kind: input, shape index: {}]   ;;  %s1798_s3 = inlined_call_operand.vmem [shape: f32[1,256], index: 3, kind: input, shape index: {}]   ;;  %s1799_s4 = inlined_call_operand.hbm [shape: bf16[128,128], index: 4, kind: input, shape index: {}]   ;;  %s1800_s5 = inlined_call_operand.vmem [shape: f32[1,128], index: 5, kind: input, shape index: {}]   ;;  %s1801_s6 = inlined_call_operand.hbm [shape: bf16[128,128], index: 6, kind: input, shape index: {}]   ;;  %s1802_s7 = inlined_call_operand.vmem [shape: f32[1,128], index: 7, kind: input, shape index: {}]   ;;  %s1803_s8 = inlined_call_operand.hbm [shape: f32[16,128], index: 8, kind: output, shape index: {}]  }
   0x1   :  { %1810 = sst [smem:[#allocation19_spill]] %s1797_s2 }
   0x2   :  { %1811 = sst [smem:[#allocation20_spill]] %s1799_s4 }
   0x3   :  { %1812 = sst [smem:[#allocation21_spill]] %s1801_s6 }
   0x4   :  { %13 = vsyncpa [#allocation3], 0 }
   0x5   :  { %15 = vsyncpa [#allocation3 + $0x1], 0 }
   0x6   :  { %16 = vsyncpa [#allocation6], 0 }
   0x7   :  { %18 = vsyncpa [#allocation6 + $0x1], 0 }
   0x8   :  { %19 = vsyncpa [#allocation9], 0 }
   0x9   :  { %20 = vsyncpa [#allocation4], 0 }
   0xa   :  { %22 = vsyncpa [#allocation4 + $0x1], 0  ;;  %s1490_s27 = smov 0   ;;  %s1492_s28 = smov 0  }
   0xb   :  { %s1494_s29 = smov 0   ;;  %s1496_s30 = smov 0  }
   0xc LB: > { %1813 = sst [smem:[#allocation17_spill]] %s1418_s27  ;;  %s1511_s9 = sadd.s32 4294967295, %s1430_s30   ;;  %s1430_s30 = sphi %s1496_s30, %s1840_s30   ;;  %s1426_s29 = sphi %s1494_s29, %s1839_s29   ;;  %s1422_s28 = sphi %s1492_s28, %s1838_s28   ;;  %s1418_s27 = sphi %s1490_s27, %s1837_s27  }
   0xd   : > { %s952_s10 = sadd.s32 4294967294, %s1430_s30   ;;  %p48_p0 = scmp.ne.s32.totalorder %s1422_s28, %s1418_s27 }
   0xe   : > { %p1804_p1 = scmp.eq.s32.totalorder %s1511_s9, 0  ;;  %p230_p3 = scmp.eq.s32.totalorder %s952_s10, 1 }
   0xf   : > { %p953_p5 = scmp.ge.s32.totalorder %s1430_s30, 1  ;;  %p237_p7 = scmp.lt.s32.totalorder %s1430_s30, 3 }
  0x10   : > { %p1520_p4 = por %p1804_p1, %p48_p0  ;;  %p1525_p6 = por %p230_p3, %p48_p0 }
  0x11   : > { %p1530_p8 = pnand %p953_p5, %p237_p7  ;;  %s1432_s14 = smov [#allocation7]  }
  0x12   : > { %s1814_s11 = scalar_select %p1520_p4, 1, 0 }
  0x13   : > { %s1815_s12 = scalar_select %p1525_p6, 1, 0 }
  0x14   : > { %s1817_s13 = scalar_select %p1530_p8, 1, 0 }
  0x15   : > { %1816 = sst [smem:[#allocation18_spill]] %s1815_s12  ;;  %s249_s15 = sshll.u32 %s1432_s14, 4  ;;  %s1534_s15 = int_to_ptr.vmem [resolvable:$true] %s249_s15 }
  0x16   : > { %p1085_p9 = pneg %p1530_p8  ;;  %s1433_s17 = smov [#allocation8]  }
  0x17   : > { %s265_s18 = sshll.u32 %s1433_s17, 4  ;;  %s1819_s2 = sld [smem:[#allocation19_spill]]  ;;  %s1545_s18 = int_to_ptr.vmem [resolvable:$true] %s265_s18 }
  0x18   : > { %p1541_p11 = pnand %p1085_p9, %p1804_p1 }
  0x1a   : > { %p1555_p13 = pneg %p1541_p11 }
  0x1d   : > { %s1208_s21 = scalar_lea.hbm %s1819_s2, 2048 }
  0x1e   : > { %p1209_p12 = scmp.ne.s32.totalorder %s1819_s2, %s1208_s21  ;;  %p1215_p5 = scmp.lt.u32.totalorder %s1208_s21, %s1819_s2 }
  0x20   : > { %p1211_p0 = pnand %p1555_p13, %p1209_p12 }
  0x22   : > { %p1212_p3 = pneg %p1211_p0 }
  0x24   : > { %p1217_p7 = pnand %p1215_p5, %p1212_p3 }
  0x26   : > { %1220 = shalt.err (!%p1217_p7)
}
  0x27   : > { %s1221_s10 = scalar_lea.vmem %s1534_s15, 2048  ;;  %p1229_p2 = scmp.lt.s32.totalorder %s1534_s15, %s1534_s15 }
  0x28   : > { %p1222_p9 = scmp.ne.s32.totalorder %s1534_s15, %s1221_s10  ;;  %p1230_p6 = scmp.lt.s32.totalorder %s1221_s10, %s1221_s10 }
  0x2a   : > { %p1224_p10 = pnand %p1222_p9, %p1555_p13  ;;  %p1231_p12 = por %p1230_p6, %p1229_p2 }
  0x2c   : > { %p1225_p1 = pneg %p1224_p10 }
  0x2e   : > { %p1232_p0 = pnand %p1231_p12, %p1225_p1 }
  0x30   : > { %1235 = shalt.err (!%p1232_p0)
}
  0x31   : > { %s1434_s14 = smov 128   ;;  %s1435_s17 = smov 8  }
  0x32   : > { %1088 = dma.hbm_to_vmem [thread:$0]  (!%p1541_p11), %s1819_s2, 2048, %s1534_s15, [#allocation6], %s1434_s14, %s1434_s14, %s1435_s17  }
  0x33   : > { %s1821_s4 = sld [smem:[#allocation20_spill]] }
  0x39   : > { %s1236_s23 = scalar_lea.hbm %s1821_s4, 1024 }
  0x3a   : > { %p1237_p2 = scmp.ne.s32.totalorder %s1821_s4, %s1236_s23  ;;  %p1243_p10 = scmp.lt.u32.totalorder %s1236_s23, %s1821_s4 }
  0x3c   : > { %p1239_p1 = pnand %p1237_p2, %p1555_p13 }
  0x3e   : > { %p1240_p6 = pneg %p1239_p1 }
  0x40   : > { %p1245_p3 = pnand %p1243_p10, %p1240_p6 }
  0x42   : > { %1248 = shalt.err (!%p1245_p3)
}
  0x43   : > { %s1249_s15 = scalar_lea.vmem %s1545_s18, 1024  ;;  %p1257_p12 = scmp.lt.s32.totalorder %s1545_s18, %s1545_s18 }
  0x44   : > { %p1250_p5 = scmp.ne.s32.totalorder %s1545_s18, %s1249_s15  ;;  %p1258_p0 = scmp.lt.s32.totalorder %s1249_s15, %s1249_s15 }
  0x46   : > { %p1252_p7 = pnand %p1250_p5, %p1555_p13  ;;  %p1259_p2 = por %p1258_p0, %p1257_p12 }
  0x48   : > { %p1253_p9 = pneg %p1252_p7 }
  0x4a   : > { %p1260_p1 = pnand %p1259_p2, %p1253_p9 }
  0x4c   : > { %1263 = shalt.err (!%p1260_p1)
}
  0x4d   : > { %s1436_s14 = smov 64   ;;  %s1437_s12 = smov 4  }
  0x4e   : > { %1091 = dma.hbm_to_vmem [thread:$0]  (!%p1541_p11), %s1821_s4, 1024, %s1545_s18, [#allocation9], %s1436_s14, %s1436_s14, %s1437_s12  }
  0x4f   : > { %s1438_s20 = smov [#allocation10]   ;;  %s1600_s22 = sadd.s32 1, %s1430_s30  }
  0x50   : > { %s281_s21 = sshll.u32 %s1438_s20, 4  ;;  %s1822_s6 = sld [smem:[#allocation21_spill]]  ;;  %s282_s21 = int_to_ptr.vmem [resolvable:$true] %s281_s21 }
  0x56   : > { %s1264_s26 = scalar_lea.hbm %s1822_s6, 1024 }
  0x57   : > { %p1265_p6 = scmp.ne.s32.totalorder %s1822_s6, %s1264_s26  ;;  %p1271_p5 = scmp.lt.u32.totalorder %s1264_s26, %s1822_s6 }
  0x59   : > { %p1267_p10 = pnand %p1265_p6, %p1555_p13 }
  0x5b   : > { %p1268_p3 = pneg %p1267_p10 }
  0x5d   : > { %p1273_p7 = pnand %p1271_p5, %p1268_p3 }
  0x5f   : > { %1276 = shalt.err (!%p1273_p7)
}
  0x60   : > { %s1277_s18 = scalar_lea.vmem %s282_s21, 1024  ;;  %p1285_p2 = scmp.lt.s32.totalorder %s282_s21, %s282_s21 }
  0x61   : > { %p1278_p9 = scmp.ne.s32.totalorder %s282_s21, %s1277_s18  ;;  %p1286_p1 = scmp.lt.s32.totalorder %s1277_s18, %s1277_s18 }
  0x63   : > { %p1280_p12 = pnand %p1278_p9, %p1555_p13  ;;  %p1287_p4 = por %p1286_p1, %p1285_p2 }
  0x65   : > { %p1281_p0 = pneg %p1280_p12 }
  0x67   : > { %p1288_p8 = pnand %p1287_p4, %p1281_p0 }
  0x69   : > { %1291 = shalt.err (!%p1288_p8)
}
  0x6a   : > { %1094 = dma.hbm_to_vmem [thread:$0]  (!%p1541_p11), %s1822_s6, 1024, %s282_s21, [#allocation9], %s1436_s14, %s1436_s14, %s1437_s12  }
  0x6b   : > { %s32_s2 = ssub.s32 %s1430_s30, %s1600_s22  ;;  %s35_s27 = sadd.s32 1, %s1426_s29 }
  0x6c   : > { %p33_p4 = scmp.eq.s32.totalorder %s32_s2, 0  ;;  %p42_p8 = scmp.ne.s32.totalorder %s1426_s29, %s1422_s28 }
  0x6d   : > { %p43_p13 = scmp.eq.s32.totalorder %s1430_s30, 0  ;;  %p1109_p6 = scmp.lt.s32.totalorder %s1430_s30, 2 }
  0x6e   : > { %s1628_s16 = scalar_select %p33_p4, %s1426_s29, %s35_s27  }
  0x6f   : > { %p44_p10 = por %p43_p13, %p42_p8  ;;  %p1823_p3 = scmp.eq.s32.totalorder %s1511_s9, 1 }
  0x70   : > { %s298_s20 = sand.u32 1, %s1426_s29   ;;  %s959_s23 = sshll.u32 %s1430_s30, 7 }
  0x71   : > { %p1632_p5 = por %p1823_p3, %p42_p8  ;;  %s1638_s25 = sshll.u32 %s298_s20, 3 }
  0x72   : > { %s1643_s12 = scalar_lea.hbm %s1795_s0, %s959_s23  ;;  %s302_s21 = scalar_lea.vmem [#allocation2], %s1638_s25 }
  0x73   : > { %s1824_s24 = scalar_select %p1632_p5, 1, 0 }
  0x74   : > { %s309_s10 = sshll.u32 %s302_s21, 4  ;;  %p1646_p11 = pnand %p1109_p6, %p44_p10  ;;  %s1650_s10 = int_to_ptr.vmem [resolvable:$true] %s309_s10 }
  0x75   : > { %s1655_s19 = scalar_lea.hbm %s1796_s1, %s959_s23  ;;  %s299_s2 = scalar_lea.sflag [#allocation3], %s298_s20 }
  0x76   : > { %s1292_s27 = scalar_lea.hbm %s1643_s12, 128  ;;  %p1294_p9 = pneg %p1646_p11 }
  0x77   : > { %p1293_p7 = scmp.ne.s32.totalorder %s1643_s12, %s1292_s27  ;;  %s1297_s21 = scalar_lea.hbm %s1795_s0, 256 }
  0x78   : > { %p1298_p2 = scmp.lt.u32.totalorder %s1643_s12, %s1795_s0  ;;  %p1299_p1 = scmp.lt.u32.totalorder %s1297_s21, %s1292_s27 }
  0x79   : > { %p1295_p12 = pnand %p1294_p9, %p1293_p7  ;;  %p1301_p8 = scmp.lt.u32.totalorder %s1292_s27, %s1643_s12 }
  0x7a   : > { %p1300_p4 = por %p1299_p1, %p1298_p2 }
  0x7b   : > { %p1296_p0 = pneg %p1295_p12 }
  0x7c   : > { %p1302_p13 = por %p1301_p8, %p1300_p4 }
  0x7e   : > { %p1303_p6 = pnand %p1302_p13, %p1296_p0 }
  0x80   : > { %1306 = shalt.err (!%p1303_p6)
}
  0x81   : > { %s1307_s20 = scalar_lea.vmem %s1650_s10, 128  ;;  %s1439_s23 = smov [#allocation2]  }
  0x82   : > { %p1308_p10 = scmp.ne.s32.totalorder %s1650_s10, %s1307_s20  ;;  %s1312_s18 = sshll.u32 %s1439_s23, 4  ;;  %s1313_s18 = int_to_ptr.vmem [resolvable:$false] %s1312_s18 }
  0x83   : > { %s1314_s4 = scalar_lea.vmem %s1313_s18, 256  ;;  %p1315_p12 = scmp.lt.s32.totalorder %s1650_s10, %s1313_s18 }
  0x84   : > { %p1310_p3 = pnand %p1308_p10, %p1294_p9  ;;  %p1316_p2 = scmp.lt.s32.totalorder %s1314_s4, %s1307_s20 }
  0x86   : > { %p1311_p7 = pneg %p1310_p3  ;;  %p1317_p1 = por %p1316_p2, %p1315_p12 }
  0x88   : > { %p1318_p4 = pnand %p1317_p1, %p1311_p7 }
  0x8a   : > { %1321 = shalt.err (!%p1318_p4)
}
  0x8b   : > { %1098 = dma.hbm_to_vmem [thread:$0]  (!%p1646_p11), %s1643_s12, 128, %s1650_s10, %s299_s2  }
  0x8c   : > { %s316_s6 = sand.u32 1, %s1430_s30   ;;  %s320_s17 = scalar_lea.vmem [#allocation5], %s1638_s25 }
  0x8d   : > { %s327_s27 = sshll.u32 %s320_s17, 4  ;;  %s317_s26 = scalar_lea.sflag [#allocation6], %s316_s6  ;;  %s328_s27 = int_to_ptr.vmem [resolvable:$true] %s327_s27 }
  0x8e   : > { %s1322_s14 = scalar_lea.hbm %s1655_s19, 128  ;;  %s1327_s23 = scalar_lea.hbm %s1796_s1, 256 }
  0x8f   : > { %p1323_p0 = scmp.ne.s32.totalorder %s1655_s19, %s1322_s14  ;;  %p1328_p6 = scmp.lt.u32.totalorder %s1655_s19, %s1796_s1 }
  0x90   : > { %p1329_p10 = scmp.lt.u32.totalorder %s1327_s23, %s1322_s14  ;;  %p1331_p7 = scmp.lt.u32.totalorder %s1322_s14, %s1655_s19 }
  0x91   : > { %p1325_p8 = pnand %p1323_p0, %p1294_p9 }
  0x92   : > { %p1330_p3 = por %p1329_p10, %p1328_p6 }
  0x93   : > { %p1326_p13 = pneg %p1325_p8 }
  0x94   : > { %p1332_p12 = por %p1331_p7, %p1330_p3 }
  0x96   : > { %p1333_p2 = pnand %p1332_p12, %p1326_p13 }
  0x98   : > { %1336 = shalt.err (!%p1333_p2)
}
  0x99   : > { %s1337_s25 = scalar_lea.vmem %s328_s27, 128  ;;  %s1440_s12 = smov [#allocation5]  }
  0x9a   : > { %p1338_p1 = scmp.ne.s32.totalorder %s328_s27, %s1337_s25  ;;  %s1342_s10 = sshll.u32 %s1440_s12, 4  ;;  %s1343_s10 = int_to_ptr.vmem [resolvable:$false] %s1342_s10 }
  0x9b   : > { %s1344_s2 = scalar_lea.vmem %s1343_s10, 256  ;;  %p1345_p8 = scmp.lt.s32.totalorder %s328_s27, %s1343_s10 }
  0x9c   : > { %p1340_p4 = pnand %p1338_p1, %p1294_p9  ;;  %p1346_p5 = scmp.lt.s32.totalorder %s1344_s2, %s1337_s25 }
  0x9e   : > { %p1341_p0 = pneg %p1340_p4  ;;  %p1347_p6 = por %p1346_p5, %p1345_p8 }
  0xa0   : > { %p1348_p10 = pnand %p1347_p6, %p1341_p0 }
  0xa2   : > { %1351 = shalt.err (!%p1348_p10)
}
  0xa3   : > { %1101 = dma.hbm_to_vmem [thread:$0]  (!%p1646_p11), %s1655_s19, 128, %s328_s27, %s317_s26  }
  0xa4   : > { %p1826_p13 = scmp.ne.s32.totalorder %s1817_s13, 0 }
  0xa5   : > { %s1706_s6 = sand.u32 (!%p1826_p13), 1, %s1422_s28   ;;  %p1827_p5 = scmp.ne.s32.totalorder (!%p1826_p13), %s1814_s11, 0 }
  0xa6   : > { %336 = sbr.rel (%p1826_p13) target bundleno = 694 (0x2b6), region = 52  ;;  %s1709_s17 = sshll.u32 (!%p1826_p13), %s1706_s6, 3 }
  0xa7   : > { %s339_s14 = scalar_lea.sflag (!%p1826_p13), [#allocation3], %s1706_s6  ;;  %s342_s21 = scalar_lea.vmem (!%p1826_p13), [#allocation2], %s1709_s17 }
  0xad   : > { %1397 = dma.done.wait (%p1827_p5), %s339_s14, 128  }
  0xae   : > { %1399 = vsyncadd (%p1827_p5), %s339_s14, 4294967168  ;;  %s347_s13 = sand.u32 1, %s1511_s9   ;;  %s351_s19 = scalar_lea.vmem [#allocation5], %s1709_s17 }
  0xaf   : > { %s348_s15 = scalar_lea.sflag [#allocation6], %s347_s13 }
  0xb0   : > { %1401 = dma.done.wait (%p1827_p5), %s348_s15, 128  }
  0xb1   : > { %1403 = vsyncadd (%p1827_p5), %s348_s15, 4294967168  ;;  %p1828_p11 = scmp.eq.s32.totalorder %s1511_s9, 0 }
  0xb3   : > { %1405 = dma.done.wait (%p1828_p11), [#allocation6], 2048   ;;  %p1829_p9 = pmov %p1828_p11 }
  0xb5   : > { %1407 = vsyncadd (%p1829_p9), [#allocation6], 4294965248  ;;  %p1830_p3 = pmov %p1829_p9 }
  0xb7   : > { %1409 = dma.done.wait (%p1830_p3), [#allocation9], 2048   ;;  %p1831_p7 = pmov %p1830_p3 }
  0xb8   : > { %v1441_v0 = vmov 0   ;;  %v1731_v1 = vld [vmem:[%s342_s21] sm:$0xff]  ;;  %v1159_v4 = vld [vmem:[#allocation7 + $0x14] ss:$8 sps:$4 sm:$0xff]   ;;  %v1161_v5 = vld [vmem:[#allocation7 + $0x10] ss:$8 sps:$4 sm:$0xff]   ;;  %v423_v31 = vlaneseq }
  0xb9   : > { %1411 = vsyncadd (%p1831_p7), [#allocation9], 4294965248  ;;  %545 = vmatprep.mubr.bf16.mxu0 %v1441_v0  ;;  %792 = vadd.xlane.f32.xlu0 %v1731_v1  ;;  %v1156_v2 = vld [vmem:[#allocation7 + $0x4] ss:$8 sps:$4 sm:$0xff]   ;;  %v1158_v3 = vld [vmem:[#allocation7] ss:$8 sps:$4 sm:$0xff]  }
  0xba   : > { %513 = vmatprep.subr.bf16.mxu0 %v1156_v2  ;;  %v1162_v6 = vld [vmem:[#allocation7 + $0x24] ss:$8 sps:$4 sm:$0xff]   ;;  %v1164_v7 = vld [vmem:[#allocation7 + $0x20] ss:$8 sps:$4 sm:$0xff]   ;;  %v1165_v8 = vld [vmem:[#allocation7 + $0x34] ss:$8 sps:$4 sm:$0xff]  }
  0xbb   : > { %514 = vmatpush1.bf16.msra.mxu0 %v1158_v3  ;;  %v1167_v9 = vld [vmem:[#allocation7 + $0x30] ss:$8 sps:$4 sm:$0xff]   ;;  %v1168_v10 = vld [vmem:[#allocation7 + $0x44] ss:$8 sps:$4 sm:$0xff]   ;;  %v1170_v11 = vld [vmem:[#allocation7 + $0x40] ss:$8 sps:$4 sm:$0xff]  }
  0xbc   : > { %515 = vmatprep.subr.bf16.mxu0 %v1159_v4  ;;  %v1171_v12 = vld [vmem:[#allocation7 + $0x54] ss:$8 sps:$4 sm:$0xff]   ;;  %v1173_v13 = vld [vmem:[#allocation7 + $0x50] ss:$8 sps:$4 sm:$0xff]   ;;  %v1174_v14 = vld [vmem:[#allocation7 + $0x64] ss:$8 sps:$4 sm:$0xff]  }
  0xbd   : > { %v1176_v15 = vld [vmem:[#allocation7 + $0x60] ss:$8 sps:$4 sm:$0xff]   ;;  %v1177_v16 = vld [vmem:[#allocation7 + $0x74] ss:$8 sps:$4 sm:$0xff]   ;;  %v1179_v17 = vld [vmem:[#allocation7 + $0x70] ss:$8 sps:$4 sm:$0xff]  }
  0xbe   : > { %v403_v18 = vld [vmem:[%s351_s19] sm:$0xff]  ;;  %v1180_v20 = vld [vmem:[#allocation8] sm:$0xff]   ;;  %v1442_v21 = vmov 0.0   ;;  %v1182_v23 = vld [vmem:[#allocation8 + $0x8] sm:$0xff]   ;;  %v796_v34 = vand.u32 127, %v423_v31  ;;  %vm1443_vm1 = vmmov 0  }
  0xbf   : > { %516 = vmatpush1.bf16.msra.mxu0 %v1161_v5  ;;  %v404_v19 = vpack.c.bf16 %v403_v18, %v403_v18  ;;  %1027 = vmatprep.subr.bf16.mxu1 %v1442_v21  ;;  %v1181_v22 = vld [vmem:[#allocation10] sm:$0xff]   ;;  %v1183_v24 = vld [vmem:[#allocation10 + $0x8] sm:$0xff]   ;;  %v1184_v25 = vld [vmem:[#allocation8 + $0x10] sm:$0xff]   ;;  %v424_v44 = vshrl.u32 %v423_v31, 7  ;;  %s1006_s4 = sshll.u32 %s1511_s9, 7  ;;  %s400_s25 = scalar_lea.vmem [#allocation11], %s1709_s17 }
  0xc0   : > { %517 = vmatprep.subr.bf16.mxu0 %v1162_v6  ;;  %1028 = vmatpush3.bf16.msra.mxu1 %v1180_v20  ;;  %v1185_v26 = vld [vmem:[#allocation10 + $0x10] sm:$0xff]   ;;  %v1186_v27 = vld [vmem:[#allocation8 + $0x18] sm:$0xff]   ;;  %v1188_v29 = vld [vmem:[#allocation8 + $0x20] sm:$0xff]   ;;  %vm797_vm0 = vcmp.lt.s32.totalorder %v796_v34, 16  ;;  %s831_s12 = sshll.u32 %s400_s25, 4  ;;  %s1751_s14 = scalar_lea.hbm %s1803_s8, %s1006_s4  ;;  %s1753_s12 = int_to_ptr.vmem [resolvable:$true] %s831_s12 }
  0xc1   : > { %1029 = vmatprep.subr.bf16.mxu1 %v1442_v21  ;;  %v1187_v28 = vld [vmem:[#allocation10 + $0x18] sm:$0xff]   ;;  %v1189_v30 = vld [vmem:[#allocation10 + $0x20] sm:$0xff]   ;;  %v1190_v32 = vld [vmem:[#allocation8 + $0x28] sm:$0xff]   ;;  %1043 = vmatprep.mubr.msk.bf16.mxu1 %vm1443_vm1, %v1442_v21  ;;  %v425_v45 = vsub.s32 0, %v424_v44  ;;  %v429_v47 = vsub.s32 1, %v424_v44  ;;  %s818_s21 = scalar_lea.sflag [#allocation4], %s1706_s6 }
  0xc2   : > { %v1191_v33 = vld [vmem:[#allocation10 + $0x28] sm:$0xff]   ;;  %v1192_v36 = vld [vmem:[#allocation8 + $0x30] sm:$0xff]   ;;  %v1194_v40 = vld [vmem:[#allocation8 + $0x38] sm:$0xff]   ;;  %s1352_s9 = scalar_lea.vmem %s1753_s12, 128  ;;  %p1832_p2 = scmp.ne.s32.totalorder %s1824_s24, 0 }
  0xc3   : > { %518 = vmatpush1.bf16.msra.mxu0 %v1164_v7  ;;  %v1193_v38 = vld [vmem:[#allocation10 + $0x30] sm:$0xff]   ;;  %v1195_v42 = vld [vmem:[#allocation10 + $0x38] sm:$0xff]   ;;  %v421_v46 = vld [vmem:[%s1798_s3] sm:$0x3]  ;;  %p1353_p12 = scmp.ne.s32.totalorder %s1753_s12, %s1352_s9  ;;  %s1444_s17 = smov [#allocation11]  }
  0xc4   : > { %519 = vmatprep.subr.bf16.mxu0 %v1165_v8  ;;  %1030 = vmatpush3.bf16.msra.mxu1 %v1182_v23  ;;  %v426_v48 = vrot.slane %v421_v46, %v425_v45  ;;  %v430_v49 = vrot.slane %v421_v46, %v429_v47  ;;  %s1356_s13 = sshll.u32 %s1444_s17, 4  ;;  %s1357_s13 = int_to_ptr.vmem [resolvable:$false] %s1356_s13 }
  0xc5   : > { %1031 = vmatprep.subr.bf16.mxu1 %v1442_v21  ;;  %p1354_p1 = pnand %p1353_p12, %p1832_p2  ;;  %s1358_s15 = scalar_lea.vmem %s1357_s13, 256 }
  0xc6   : > { %p1359_p0 = scmp.lt.s32.totalorder %s1753_s12, %s1357_s13  ;;  %p1360_p8 = scmp.lt.s32.totalorder %s1358_s15, %s1352_s9 }
  0xc7   : > { %520 = vmatpush1.bf16.msra.mxu0 %v1167_v9  ;;  %p1355_p4 = pneg %p1354_p1 }
  0xc8   : > { %521 = vmatprep.subr.bf16.mxu0 %v1168_v10  ;;  %1032 = vmatpush3.bf16.msra.mxu1 %v1184_v25  ;;  %p1361_p6 = por %p1360_p8, %p1359_p0 }
  0xc9   : > { %1033 = vmatprep.subr.bf16.mxu1 %v1442_v21 }
  0xca   : > { %p1362_p10 = pnand %p1361_p6, %p1355_p4 }
  0xcb   : > { %522 = vmatpush1.bf16.msra.mxu0 %v1170_v11 }
  0xcc   : > { %523 = vmatprep.subr.bf16.mxu0 %v1171_v12  ;;  %1034 = vmatpush3.bf16.msra.mxu1 %v1186_v27 }
  0xcd   : > { %1035 = vmatprep.subr.bf16.mxu1 %v1442_v21 }
  0xcf   : > { %524 = vmatpush1.bf16.msra.mxu0 %v1173_v13  ;;  %v987_v13 = vld [vmem:[%s1800_s5] ss:$0 sm:$0xff] }
  0xd0   : > { %525 = vmatprep.subr.bf16.mxu0 %v1174_v14  ;;  %1036 = vmatpush3.bf16.msra.mxu1 %v1188_v29  ;;  %v996_v14 = vld [vmem:[%s1802_s7] ss:$0 sm:$0xff] }
  0xd1   : > { %1037 = vmatprep.subr.bf16.mxu1 %v1442_v21 }
  0xd3   : > { %526 = vmatpush1.bf16.msra.mxu0 %v1176_v15 }
  0xd4   : > { %527 = vmatprep.subr.bf16.mxu0 %v1177_v16  ;;  %1038 = vmatpush3.bf16.msra.mxu1 %v1190_v32 }
  0xd5   : > { %1039 = vmatprep.subr.bf16.mxu1 %v1442_v21 }
  0xd7   : > { %528 = vmatpush1.bf16.msra.mxu0 %v1179_v17 }
  0xd8   : > { %1047 = vmatprep.subr.bf16.mxu0 %v1442_v21  ;;  %1040 = vmatpush3.bf16.msra.mxu1 %v1192_v36 }
  0xd9   : > { %1041 = vmatprep.subr.bf16.mxu1 %v1442_v21 }
  0xda   : > { %546 = vmatmul.mubr.bf16.vlgmr.msra.gmra.mrb[0].mxu0 %v404_v19 }
  0xdb   : > { %1048 = vmatpush3.bf16.msra.mxu0 %v1181_v22  ;;  %1063 = vmatprep.mubr.msk.bf16.mxu0 %vm1443_vm1, %v1442_v21 }
  0xdc   : > { %1049 = vmatprep.subr.bf16.mxu0 %v1442_v21  ;;  %1042 = vmatpush3.bf16.msra.mxu1 %v1194_v40 }
  0xdf   : > { %1050 = vmatpush3.bf16.msra.mxu0 %v1183_v24 }
  0xe0   : > { %1051 = vmatprep.subr.bf16.mxu0 %v1442_v21 }
  0xe3   : > { %1052 = vmatpush3.bf16.msra.mxu0 %v1185_v26 }
  0xe4   : > { %1053 = vmatprep.subr.bf16.mxu0 %v1442_v21 }
  0xe7   : > { %1054 = vmatpush3.bf16.msra.mxu0 %v1187_v28 }
  0xe8   : > { %1055 = vmatprep.subr.bf16.mxu0 %v1442_v21 }
  0xeb   : > { %1056 = vmatpush3.bf16.msra.mxu0 %v1189_v30 }
  0xec   : > { %1057 = vmatprep.subr.bf16.mxu0 %v1442_v21 }
  0xef   : > { %1058 = vmatpush3.bf16.msra.mxu0 %v1191_v33 }
  0xf0   : > { %1059 = vmatprep.subr.bf16.mxu0 %v1442_v21 }
  0xf3   : > { %1060 = vmatpush3.bf16.msra.mxu0 %v1193_v38 }
  0xf4   : > { %1061 = vmatprep.subr.bf16.mxu0 %v1442_v21 }
  0xf7   : > { %1062 = vmatpush3.bf16.msra.mxu0 %v1195_v42 }
 0x146   : > { %v793_v35 = vpop.xlane.xlu0 %792 }
 0x147   : > { %v794_v37 = vmul.f32 0.0625, %v793_v35 }
 0x149   : > { %v798_v39 = vsub.f32 %v1731_v1, %v794_v37 }
 0x14b   : > { %v799_v41 = vsel %vm797_vm0, %v798_v39, 0.0 }
 0x14c   : > { %v800_v43 = vmul.f32 %v799_v41, %v799_v41 }
 0x14e   : > { %801 = vadd.xlane.f32.xlu0 %v800_v43 }
 0x1ad   : > { %v547_v50 = vpop.f32.mrb[0].mxu0 }
 0x1ae   : > { %v548_v51 = vadd.f32 %v547_v50, %v426_v48  ;;  %v549_v52 = vpop.f32.mrb[1].mxu0 }
 0x1af   : > { %v550_v53 = vadd.f32 %v549_v52, %v430_v49  ;;  %v551_v54 = vpop.f32.mrb[2].mxu0 }
 0x1b0   : > { %v985_v55 = vmul.f32 -1.442695, %v548_v51  ;;  %v552_v56 = vpop.f32.mrb[3].mxu0 }
 0x1b1   : > { %v986_v57 = vmul.f32 -1.442695, %v550_v53 }
 0x1b2   : > { %1196 = vpow2.f32 %v985_v55 }
 0x1b3   : > { %1198 = vpow2.f32 %v986_v57 }
 0x1bc   : > { %v1197_v58 = vpop.eup %1196 }
 0x1bd   : > { %v1199_v59 = vpop.eup %1198  ;;  %v560_v60 = vadd.f32 1.0, %v1197_v58 }
 0x1be   : > { %v561_v61 = vadd.f32 1.0, %v1199_v59 }
 0x1bf   : > { %1200 = vrcp.f32 %v560_v60 }
 0x1c0   : > { %1202 = vrcp.f32 %v561_v61 }
 0x1c9   : > { %v1201_v62 = vpop.eup %1200 }
 0x1ca   : > { %v1203_v63 = vpop.eup %1202  ;;  %v566_v0 = vmul.f32 %v1201_v62, %v548_v51 }
 0x1cb   : > { %v567_v1 = vmul.f32 %v1203_v63, %v550_v53 }
 0x1cc   : > { %v568_v2 = vpack.c.bf16 %v566_v0, %v566_v0 }
 0x1cd   : > { %v569_v3 = vpack.c.bf16 %v567_v1, %v567_v1 }
 0x1ce   : > { %1044 = vmatmul.mubr.bf16.vlgmr.msra.gmra.mrb[0].mxu1 %v568_v2 }
 0x1cf   : > { %1064 = vmatmul.mubr.bf16.vlgmr.msra.gmra.mrb[4].mxu0 %v569_v3 }
 0x1db   : > { %v802_v4 = vpop.xlane.xlu0 %801 }
 0x1dc   : > { %v803_v5 = vmul.f32 0.06666667, %v802_v4 }
 0x1de   : > { %1204 = vrsqrt.f32 %v803_v5  ;;  %vm806_vm2 = vcmp.eq.f32.partialorder %v803_v5, inf  ;;  %v809_v8 = vand.u32 2147483648, %v803_v5  ;;  %vm808_vm3 = vcmp.eq.f32.partialorder %v803_v5, 0.0 }
 0x1e8   : > { %v1205_v6 = vpop.eup %1204 }
 0x1e9   : > { %v805_v7 = vmul.f32 %v1205_v6, %v803_v5 }
 0x1eb   : > { %v807_v9 = vsel %vm806_vm2, %v803_v5, %v805_v7 }
 0x1ec   : > { %v810_v10 = vsel %vm808_vm3, %v809_v8, %v807_v9 }
 0x1ed   : > { %v811_v11 = vadd.f32 1e-06, %v810_v10 }
 0x1ef   : > { %1206 = vrcp.f32 %v811_v11 }
 0x1f9   : > { %v1207_v12 = vpop.eup %1206 }
 0x1fa   : > { %v813_v17 = vmul.f32 %v1207_v12, %v799_v41 }
 0x2a1   : > { %v675_v15 = vpop.f32.mrb[0].mxu1 }
 0x2a2   : > { %v676_v16 = vadd.f32 %v987_v13, %v675_v15  ;;  %v1045_v18 = vpop.f32.mrb[1].mxu1  ;;  %v786_v19 = vpop.f32.mrb[4].mxu0 }
 0x2a3   : > { %v787_v20 = vadd.f32 %v996_v14, %v786_v19  ;;  %v678_v21 = vpop.f32.mrb[2].mxu1  ;;  %v1065_v22 = vpop.f32.mrb[5].mxu0 }
 0x2a4   : > { %v814_v23 = vmul.f32 %v813_v17, %v676_v16  ;;  %v1046_v24 = vpop.f32.mrb[3].mxu1  ;;  %v789_v25 = vpop.f32.mrb[6].mxu0 }
 0x2a5   : > { %v1066_v26 = vpop.f32.mrb[7].mxu0 }
 0x2a6   : > { %v815_v27 = vadd.f32 %v814_v23, %v787_v20 }
 0x2a8   : > { %816 = vst [vmem:[%s400_s25] sm:$0xff] %v815_v27 }
 0x2a9   : > { %1365 = shalt.err (!%p1362_p10)
}
 0x2aa   : > { %s1366_s6 = scalar_lea.hbm %s1751_s14, 128  ;;  %s1370_s27 = scalar_lea.hbm %s1803_s8, 256 }
 0x2ab   : > { %p1367_p13 = scmp.ne.s32.totalorder %s1751_s14, %s1366_s6  ;;  %p1371_p9 = scmp.lt.u32.totalorder %s1751_s14, %s1803_s8 }
 0x2ac   : > { %p1372_p3 = scmp.lt.u32.totalorder %s1370_s27, %s1366_s6  ;;  %p1374_p12 = scmp.lt.u32.totalorder %s1366_s6, %s1751_s14 }
 0x2ad   : > { %p1368_p5 = pnand %p1367_p13, %p1832_p2 }
 0x2ae   : > { %p1373_p7 = por %p1372_p3, %p1371_p9 }
 0x2af   : > { %p1369_p11 = pneg %p1368_p5 }
 0x2b0   : > { %p1375_p1 = por %p1374_p12, %p1373_p7 }
 0x2b2   : > { %p1376_p4 = pnand %p1375_p1, %p1369_p11 }
 0x2b4   : > { %1379 = shalt.err (!%p1376_p4)
}
 0x2b5   : > { %1083 = dma.vmem_to_hbm [thread:$0]  (%p1832_p2), %s1753_s12, 128, %s1751_s14, %s818_s21  }
 0x2b6 PF: > { %s1833_s23 = sld [smem:[#allocation17_spill]]  ;;  %s1834_s18 = sld [smem:[#allocation18_spill]] }
 0x2b7   : > { %p1836_p8 = scmp.ge.s32.totalorder %s1430_s30, 2 }
 0x2bc   : > { %s843_s4 = sand.u32 1, %s1833_s23   ;;  %p1835_p0 = scmp.ne.s32.totalorder %s1834_s18, 0 }
 0x2bd   : > { %s844_s25 = scalar_lea.sflag [#allocation4], %s843_s4 }
 0x2be   : > { %p1103_p6 = pnand %p1836_p8, %p1835_p0 }
 0x2c0   : > { %1413 = dma.done.wait (!%p1103_p6), %s844_s25, 128  }
 0x2c1   : > { %1415 = vsyncadd (!%p1103_p6), %s844_s25, 4294967168  ;;  %p25_p10 = scmp.ge.s32.totalorder %s1600_s22, 4   ;;  %s1837_s27 = smov %s1422_s28 }
 0x2c2   : > { %s1838_s28 = smov %s1426_s29  ;;  %s1839_s29 = smov %s1628_s16 }
 0x2c3   : > { %s1840_s30 = smov %s1600_s22  ;;  %27 = sbr.rel (!%p25_p10) target bundleno = 12 (0xc), region = 122 }
 0x2ca   :  { %849 = vsyncpa [#allocation3], 1 }
 0x2cb   :  { %851 = vsyncpa [#allocation3 + $0x1], 1 }
 0x2cc   :  { %852 = vsyncpa [#allocation6], 1 }
 0x2cd   :  { %854 = vsyncpa [#allocation6 + $0x1], 1 }
 0x2ce   :  { %855 = vsyncpa [#allocation9], 1 }
 0x2cf   :  { %856 = vsyncpa [#allocation4], 1 }
 0x2d0   :  { %858 = vsyncpa [#allocation4 + $0x1], 1 }

// kernel: tpu_custom_call.1
= control target key start
LH: loop header
LB: loop body
LE: loop exit
PB: predicated region body
PF: predicated region fallthrough
CT: control target
= control target key end

     0   :  { %s1795_s0 = inlined_call_operand.hbm [shape: f32[16,128], index: 0, kind: input, shape index: {}]   ;;  %s1796_s1 = inlined_call_operand.hbm [shape: f32[16,128], index: 1, kind: input, shape index: {}]   ;;  %s1797_s2 = inlined_call_operand.hbm [shape: bf16[128,256], index: 2, kind: input, shape index: {}]   ;;  %s1798_s3 = inlined_call_operand.vmem [shape: f32[1,256], index: 3, kind: input, shape index: {}]   ;;  %s1799_s4 = inlined_call_operand.hbm [shape: bf16[128,128], index: 4, kind: input, shape index: {}]   ;;  %s1800_s5 = inlined_call_operand.vmem [shape: f32[1,128], index: 5, kind: input, shape index: {}]   ;;  %s1801_s6 = inlined_call_operand.hbm [shape: bf16[128,128], index: 6, kind: input, shape index: {}]   ;;  %s1802_s7 = inlined_call_operand.vmem [shape: f32[1,128], index: 7, kind: input, shape index: {}]   ;;  %s1803_s8 = inlined_call_operand.hbm [shape: f32[16,128], index: 8, kind: output, shape index: {}]  }
   0x1   :  { %1810 = sst [smem:[#allocation19_spill]] %s1797_s2 }
   0x2   :  { %1811 = sst [smem:[#allocation20_spill]] %s1799_s4 }
   0x3   :  { %1812 = sst [smem:[#allocation21_spill]] %s1801_s6 }
   0x4   :  { %13 = vsyncpa [#allocation3], 0 }
   0x5   :  { %15 = vsyncpa [#allocation3 + $0x1], 0 }
   0x6   :  { %16 = vsyncpa [#allocation6], 0 }
   0x7   :  { %18 = vsyncpa [#allocation6 + $0x1], 0 }
   0x8   :  { %19 = vsyncpa [#allocation9], 0 }
   0x9   :  { %20 = vsyncpa [#allocation4], 0 }
   0xa   :  { %22 = vsyncpa [#allocation4 + $0x1], 0  ;;  %s1490_s27 = smov 0   ;;  %s1492_s28 = smov 0  }
   0xb   :  { %s1494_s29 = smov 0   ;;  %s1496_s30 = smov 0  }
   0xc LB: > { %1813 = sst [smem:[#allocation17_spill]] %s1418_s27  ;;  %s1511_s9 = sadd.s32 4294967295, %s1430_s30   ;;  %s1430_s30 = sphi %s1496_s30, %s1840_s30   ;;  %s1426_s29 = sphi %s1494_s29, %s1839_s29   ;;  %s1422_s28 = sphi %s1492_s28, %s1838_s28   ;;  %s1418_s27 = sphi %s1490_s27, %s1837_s27  }
   0xd   : > { %s952_s10 = sadd.s32 4294967294, %s1430_s30   ;;  %p48_p0 = scmp.ne.s32.totalorder %s1422_s28, %s1418_s27 }
   0xe   : > { %p1804_p1 = scmp.eq.s32.totalorder %s1511_s9, 0  ;;  %p230_p3 = scmp.eq.s32.totalorder %s952_s10, 1 }
   0xf   : > { %p953_p5 = scmp.ge.s32.totalorder %s1430_s30, 1  ;;  %p237_p7 = scmp.lt.s32.totalorder %s1430_s30, 3 }
  0x10   : > { %p1520_p4 = por %p1804_p1, %p48_p0  ;;  %p1525_p6 = por %p230_p3, %p48_p0 }
  0x11   : > { %p1530_p8 = pnand %p953_p5, %p237_p7  ;;  %s1432_s14 = smov [#allocation7]  }
  0x12   : > { %s1814_s11 = scalar_select %p1520_p4, 1, 0 }
  0x13   : > { %s1815_s12 = scalar_select %p1525_p6, 1, 0 }
  0x14   : > { %s1817_s13 = scalar_select %p1530_p8, 1, 0 }
  0x15   : > { %1816 = sst [smem:[#allocation18_spill]] %s1815_s12  ;;  %s249_s15 = sshll.u32 %s1432_s14, 4  ;;  %s1534_s15 = int_to_ptr.vmem [resolvable:$true] %s249_s15 }
  0x16   : > { %p1085_p9 = pneg %p1530_p8  ;;  %s1433_s17 = smov [#allocation8]  }
  0x17   : > { %s265_s18 = sshll.u32 %s1433_s17, 4  ;;  %s1819_s2 = sld [smem:[#allocation19_spill]]  ;;  %s1545_s18 = int_to_ptr.vmem [resolvable:$true] %s265_s18 }
  0x18   : > { %p1541_p11 = pnand %p1085_p9, %p1804_p1 }
  0x1a   : > { %p1555_p13 = pneg %p1541_p11 }
  0x1d   : > { %s1208_s21 = scalar_lea.hbm %s1819_s2, 2048 }
  0x1e   : > { %p1209_p12 = scmp.ne.s32.totalorder %s1819_s2, %s1208_s21  ;;  %p1215_p5 = scmp.lt.u32.totalorder %s1208_s21, %s1819_s2 }
  0x20   : > { %p1211_p0 = pnand %p1555_p13, %p1209_p12 }
  0x22   : > { %p1212_p3 = pneg %p1211_p0 }
  0x24   : > { %p1217_p7 = pnand %p1215_p5, %p1212_p3 }
  0x26   : > { %1220 = shalt.err (!%p1217_p7)
}
  0x27   : > { %s1221_s10 = scalar_lea.vmem %s1534_s15, 2048  ;;  %p1229_p2 = scmp.lt.s32.totalorder %s1534_s15, %s1534_s15 }
  0x28   : > { %p1222_p9 = scmp.ne.s32.totalorder %s1534_s15, %s1221_s10  ;;  %p1230_p6 = scmp.lt.s32.totalorder %s1221_s10, %s1221_s10 }
  0x2a   : > { %p1224_p10 = pnand %p1222_p9, %p1555_p13  ;;  %p1231_p12 = por %p1230_p6, %p1229_p2 }
  0x2c   : > { %p1225_p1 = pneg %p1224_p10 }
  0x2e   : > { %p1232_p0 = pnand %p1231_p12, %p1225_p1 }
  0x30   : > { %1235 = shalt.err (!%p1232_p0)
}
  0x31   : > { %s1434_s14 = smov 128   ;;  %s1435_s17 = smov 8  }
  0x32   : > { %1088 = dma.hbm_to_vmem [thread:$0]  (!%p1541_p11), %s1819_s2, 2048, %s1534_s15, [#allocation6], %s1434_s14, %s1434_s14, %s1435_s17  }
  0x33   : > { %s1821_s4 = sld [smem:[#allocation20_spill]] }
  0x39   : > { %s1236_s23 = scalar_lea.hbm %s1821_s4, 1024 }
  0x3a   : > { %p1237_p2 = scmp.ne.s32.totalorder %s1821_s4, %s1236_s23  ;;  %p1243_p10 = scmp.lt.u32.totalorder %s1236_s23, %s1821_s4 }
  0x3c   : > { %p1239_p1 = pnand %p1237_p2, %p1555_p13 }
  0x3e   : > { %p1240_p6 = pneg %p1239_p1 }
  0x40   : > { %p1245_p3 = pnand %p1243_p10, %p1240_p6 }
  0x42   : > { %1248 = shalt.err (!%p1245_p3)
}
  0x43   : > { %s1249_s15 = scalar_lea.vmem %s1545_s18, 1024  ;;  %p1257_p12 = scmp.lt.s32.totalorder %s1545_s18, %s1545_s18 }
  0x44   : > { %p1250_p5 = scmp.ne.s32.totalorder %s1545_s18, %s1249_s15  ;;  %p1258_p0 = scmp.lt.s32.totalorder %s1249_s15, %s1249_s15 }
  0x46   : > { %p1252_p7 = pnand %p1250_p5, %p1555_p13  ;;  %p1259_p2 = por %p1258_p0, %p1257_p12 }
  0x48   : > { %p1253_p9 = pneg %p1252_p7 }
  0x4a   : > { %p1260_p1 = pnand %p1259_p2, %p1253_p9 }
  0x4c   : > { %1263 = shalt.err (!%p1260_p1)
}
  0x4d   : > { %s1436_s14 = smov 64   ;;  %s1437_s12 = smov 4  }
  0x4e   : > { %1091 = dma.hbm_to_vmem [thread:$0]  (!%p1541_p11), %s1821_s4, 1024, %s1545_s18, [#allocation9], %s1436_s14, %s1436_s14, %s1437_s12  }
  0x4f   : > { %s1438_s20 = smov [#allocation10]   ;;  %s1600_s22 = sadd.s32 1, %s1430_s30  }
  0x50   : > { %s281_s21 = sshll.u32 %s1438_s20, 4  ;;  %s1822_s6 = sld [smem:[#allocation21_spill]]  ;;  %s282_s21 = int_to_ptr.vmem [resolvable:$true] %s281_s21 }
  0x56   : > { %s1264_s26 = scalar_lea.hbm %s1822_s6, 1024 }
  0x57   : > { %p1265_p6 = scmp.ne.s32.totalorder %s1822_s6, %s1264_s26  ;;  %p1271_p5 = scmp.lt.u32.totalorder %s1264_s26, %s1822_s6 }
  0x59   : > { %p1267_p10 = pnand %p1265_p6, %p1555_p13 }
  0x5b   : > { %p1268_p3 = pneg %p1267_p10 }
  0x5d   : > { %p1273_p7 = pnand %p1271_p5, %p1268_p3 }
  0x5f   : > { %1276 = shalt.err (!%p1273_p7)
}
  0x60   : > { %s1277_s18 = scalar_lea.vmem %s282_s21, 1024  ;;  %p1285_p2 = scmp.lt.s32.totalorder %s282_s21, %s282_s21 }
  0x61   : > { %p1278_p9 = scmp.ne.s32.totalorder %s282_s21, %s1277_s18  ;;  %p1286_p1 = scmp.lt.s32.totalorder %s1277_s18, %s1277_s18 }
  0x63   : > { %p1280_p12 = pnand %p1278_p9, %p1555_p13  ;;  %p1287_p4 = por %p1286_p1, %p1285_p2 }
  0x65   : > { %p1281_p0 = pneg %p1280_p12 }
  0x67   : > { %p1288_p8 = pnand %p1287_p4, %p1281_p0 }
  0x69   : > { %1291 = shalt.err (!%p1288_p8)
}
  0x6a   : > { %1094 = dma.hbm_to_vmem [thread:$0]  (!%p1541_p11), %s1822_s6, 1024, %s282_s21, [#allocation9], %s1436_s14, %s1436_s14, %s1437_s12  }
  0x6b   : > { %s32_s2 = ssub.s32 %s1430_s30, %s1600_s22  ;;  %s35_s27 = sadd.s32 1, %s1426_s29 }
  0x6c   : > { %p33_p4 = scmp.eq.s32.totalorder %s32_s2, 0  ;;  %p42_p8 = scmp.ne.s32.totalorder %s1426_s29, %s1422_s28 }
  0x6d   : > { %p43_p13 = scmp.eq.s32.totalorder %s1430_s30, 0  ;;  %p1109_p6 = scmp.lt.s32.totalorder %s1430_s30, 2 }
  0x6e   : > { %s1628_s16 = scalar_select %p33_p4, %s1426_s29, %s35_s27  }
  0x6f   : > { %p44_p10 = por %p43_p13, %p42_p8  ;;  %p1823_p3 = scmp.eq.s32.totalorder %s1511_s9, 1 }
  0x70   : > { %s298_s20 = sand.u32 1, %s1426_s29   ;;  %s959_s23 = sshll.u32 %s1430_s30, 7 }
  0x71   : > { %p1632_p5 = por %p1823_p3, %p42_p8  ;;  %s1638_s25 = sshll.u32 %s298_s20, 3 }
  0x72   : > { %s1643_s12 = scalar_lea.hbm %s1795_s0, %s959_s23  ;;  %s302_s21 = scalar_lea.vmem [#allocation2], %s1638_s25 }
  0x73   : > { %s1824_s24 = scalar_select %p1632_p5, 1, 0 }
  0x74   : > { %s309_s10 = sshll.u32 %s302_s21, 4  ;;  %p1646_p11 = pnand %p1109_p6, %p44_p10  ;;  %s1650_s10 = int_to_ptr.vmem [resolvable:$true] %s309_s10 }
  0x75   : > { %s1655_s19 = scalar_lea.hbm %s1796_s1, %s959_s23  ;;  %s299_s2 = scalar_lea.sflag [#allocation3], %s298_s20 }
  0x76   : > { %s1292_s27 = scalar_lea.hbm %s1643_s12, 128  ;;  %p1294_p9 = pneg %p1646_p11 }
  0x77   : > { %p1293_p7 = scmp.ne.s32.totalorder %s1643_s12, %s1292_s27  ;;  %s1297_s21 = scalar_lea.hbm %s1795_s0, 256 }
  0x78   : > { %p1298_p2 = scmp.lt.u32.totalorder %s1643_s12, %s1795_s0  ;;  %p1299_p1 = scmp.lt.u32.totalorder %s1297_s21, %s1292_s27 }
  0x79   : > { %p1295_p12 = pnand %p1294_p9, %p1293_p7  ;;  %p1301_p8 = scmp.lt.u32.totalorder %s1292_s27, %s1643_s12 }
  0x7a   : > { %p1300_p4 = por %p1299_p1, %p1298_p2 }
  0x7b   : > { %p1296_p0 = pneg %p1295_p12 }
  0x7c   : > { %p1302_p13 = por %p1301_p8, %p1300_p4 }
  0x7e   : > { %p1303_p6 = pnand %p1302_p13, %p1296_p0 }
  0x80   : > { %1306 = shalt.err (!%p1303_p6)
}
  0x81   : > { %s1307_s20 = scalar_lea.vmem %s1650_s10, 128  ;;  %s1439_s23 = smov [#allocation2]  }
  0x82   : > { %p1308_p10 = scmp.ne.s32.totalorder %s1650_s10, %s1307_s20  ;;  %s1312_s18 = sshll.u32 %s1439_s23, 4  ;;  %s1313_s18 = int_to_ptr.vmem [resolvable:$false] %s1312_s18 }
  0x83   : > { %s1314_s4 = scalar_lea.vmem %s1313_s18, 256  ;;  %p1315_p12 = scmp.lt.s32.totalorder %s1650_s10, %s1313_s18 }
  0x84   : > { %p1310_p3 = pnand %p1308_p10, %p1294_p9  ;;  %p1316_p2 = scmp.lt.s32.totalorder %s1314_s4, %s1307_s20 }
  0x86   : > { %p1311_p7 = pneg %p1310_p3  ;;  %p1317_p1 = por %p1316_p2, %p1315_p12 }
  0x88   : > { %p1318_p4 = pnand %p1317_p1, %p1311_p7 }
  0x8a   : > { %1321 = shalt.err (!%p1318_p4)
}
  0x8b   : > { %1098 = dma.hbm_to_vmem [thread:$0]  (!%p1646_p11), %s1643_s12, 128, %s1650_s10, %s299_s2  }
  0x8c   : > { %s316_s6 = sand.u32 1, %s1430_s30   ;;  %s320_s17 = scalar_lea.vmem [#allocation5], %s1638_s25 }
  0x8d   : > { %s327_s27 = sshll.u32 %s320_s17, 4  ;;  %s317_s26 = scalar_lea.sflag [#allocation6], %s316_s6  ;;  %s328_s27 = int_to_ptr.vmem [resolvable:$true] %s327_s27 }
  0x8e   : > { %s1322_s14 = scalar_lea.hbm %s1655_s19, 128  ;;  %s1327_s23 = scalar_lea.hbm %s1796_s1, 256 }
  0x8f   : > { %p1323_p0 = scmp.ne.s32.totalorder %s1655_s19, %s1322_s14  ;;  %p1328_p6 = scmp.lt.u32.totalorder %s1655_s19, %s1796_s1 }
  0x90   : > { %p1329_p10 = scmp.lt.u32.totalorder %s1327_s23, %s1322_s14  ;;  %p1331_p7 = scmp.lt.u32.totalorder %s1322_s14, %s1655_s19 }
  0x91   : > { %p1325_p8 = pnand %p1323_p0, %p1294_p9 }
  0x92   : > { %p1330_p3 = por %p1329_p10, %p1328_p6 }
  0x93   : > { %p1326_p13 = pneg %p1325_p8 }
  0x94   : > { %p1332_p12 = por %p1331_p7, %p1330_p3 }
  0x96   : > { %p1333_p2 = pnand %p1332_p12, %p1326_p13 }
  0x98   : > { %1336 = shalt.err (!%p1333_p2)
}
  0x99   : > { %s1337_s25 = scalar_lea.vmem %s328_s27, 128  ;;  %s1440_s12 = smov [#allocation5]  }
  0x9a   : > { %p1338_p1 = scmp.ne.s32.totalorder %s328_s27, %s1337_s25  ;;  %s1342_s10 = sshll.u32 %s1440_s12, 4  ;;  %s1343_s10 = int_to_ptr.vmem [resolvable:$false] %s1342_s10 }
  0x9b   : > { %s1344_s2 = scalar_lea.vmem %s1343_s10, 256  ;;  %p1345_p8 = scmp.lt.s32.totalorder %s328_s27, %s1343_s10 }
  0x9c   : > { %p1340_p4 = pnand %p1338_p1, %p1294_p9  ;;  %p1346_p5 = scmp.lt.s32.totalorder %s1344_s2, %s1337_s25 }
  0x9e   : > { %p1341_p0 = pneg %p1340_p4  ;;  %p1347_p6 = por %p1346_p5, %p1345_p8 }
  0xa0   : > { %p1348_p10 = pnand %p1347_p6, %p1341_p0 }
  0xa2   : > { %1351 = shalt.err (!%p1348_p10)
}
  0xa3   : > { %1101 = dma.hbm_to_vmem [thread:$0]  (!%p1646_p11), %s1655_s19, 128, %s328_s27, %s317_s26  }
  0xa4   : > { %p1826_p13 = scmp.ne.s32.totalorder %s1817_s13, 0 }
  0xa5   : > { %s1706_s6 = sand.u32 (!%p1826_p13), 1, %s1422_s28   ;;  %p1827_p5 = scmp.ne.s32.totalorder (!%p1826_p13), %s1814_s11, 0 }
  0xa6   : > { %336 = sbr.rel (%p1826_p13) target bundleno = 694 (0x2b6), region = 52  ;;  %s1709_s17 = sshll.u32 (!%p1826_p13), %s1706_s6, 3 }
  0xa7   : > { %s339_s14 = scalar_lea.sflag (!%p1826_p13), [#allocation3], %s1706_s6  ;;  %s342_s21 = scalar_lea.vmem (!%p1826_p13), [#allocation2], %s1709_s17 }
  0xad   : > { %1397 = dma.done.wait (%p1827_p5), %s339_s14, 128  }
  0xae   : > { %1399 = vsyncadd (%p1827_p5), %s339_s14, 4294967168  ;;  %s347_s13 = sand.u32 1, %s1511_s9   ;;  %s351_s19 = scalar_lea.vmem [#allocation5], %s1709_s17 }
  0xaf   : > { %s348_s15 = scalar_lea.sflag [#allocation6], %s347_s13 }
  0xb0   : > { %1401 = dma.done.wait (%p1827_p5), %s348_s15, 128  }
  0xb1   : > { %1403 = vsyncadd (%p1827_p5), %s348_s15, 4294967168  ;;  %p1828_p11 = scmp.eq.s32.totalorder %s1511_s9, 0 }
  0xb3   : > { %1405 = dma.done.wait (%p1828_p11), [#allocation6], 2048   ;;  %p1829_p9 = pmov %p1828_p11 }
  0xb5   : > { %1407 = vsyncadd (%p1829_p9), [#allocation6], 4294965248  ;;  %p1830_p3 = pmov %p1829_p9 }
  0xb7   : > { %1409 = dma.done.wait (%p1830_p3), [#allocation9], 2048   ;;  %p1831_p7 = pmov %p1830_p3 }
  0xb8   : > { %v1441_v0 = vmov 0   ;;  %v1731_v1 = vld [vmem:[%s342_s21] sm:$0xff]  ;;  %v1159_v4 = vld [vmem:[#allocation7 + $0x14] ss:$8 sps:$4 sm:$0xff]   ;;  %v1161_v5 = vld [vmem:[#allocation7 + $0x10] ss:$8 sps:$4 sm:$0xff]   ;;  %v423_v31 = vlaneseq }
  0xb9   : > { %1411 = vsyncadd (%p1831_p7), [#allocation9], 4294965248  ;;  %545 = vmatprep.mubr.bf16.mxu0 %v1441_v0  ;;  %792 = vadd.xlane.f32.xlu0 %v1731_v1  ;;  %v1156_v2 = vld [vmem:[#allocation7 + $0x4] ss:$8 sps:$4 sm:$0xff]   ;;  %v1158_v3 = vld [vmem:[#allocation7] ss:$8 sps:$4 sm:$0xff]  }
  0xba   : > { %513 = vmatprep.subr.bf16.mxu0 %v1156_v2  ;;  %v1162_v6 = vld [vmem:[#allocation7 + $0x24] ss:$8 sps:$4 sm:$0xff]   ;;  %v1164_v7 = vld [vmem:[#allocation7 + $0x20] ss:$8 sps:$4 sm:$0xff]   ;;  %v1165_v8 = vld [vmem:[#allocation7 + $0x34] ss:$8 sps:$4 sm:$0xff]  }
  0xbb   : > { %514 = vmatpush1.bf16.msra.mxu0 %v1158_v3  ;;  %v1167_v9 = vld [vmem:[#allocation7 + $0x30] ss:$8 sps:$4 sm:$0xff]   ;;  %v1168_v10 = vld [vmem:[#allocation7 + $0x44] ss:$8 sps:$4 sm:$0xff]   ;;  %v1170_v11 = vld [vmem:[#allocation7 + $0x40] ss:$8 sps:$4 sm:$0xff]  }
  0xbc   : > { %515 = vmatprep.subr.bf16.mxu0 %v1159_v4  ;;  %v1171_v12 = vld [vmem:[#allocation7 + $0x54] ss:$8 sps:$4 sm:$0xff]   ;;  %v1173_v13 = vld [vmem:[#allocation7 + $0x50] ss:$8 sps:$4 sm:$0xff]   ;;  %v1174_v14 = vld [vmem:[#allocation7 + $0x64] ss:$8 sps:$4 sm:$0xff]  }
  0xbd   : > { %v1176_v15 = vld [vmem:[#allocation7 + $0x60] ss:$8 sps:$4 sm:$0xff]   ;;  %v1177_v16 = vld [vmem:[#allocation7 + $0x74] ss:$8 sps:$4 sm:$0xff]   ;;  %v1179_v17 = vld [vmem:[#allocation7 + $0x70] ss:$8 sps:$4 sm:$0xff]  }
  0xbe   : > { %v403_v18 = vld [vmem:[%s351_s19] sm:$0xff]  ;;  %v1180_v20 = vld [vmem:[#allocation8] sm:$0xff]   ;;  %v1442_v21 = vmov 0.0   ;;  %v1182_v23 = vld [vmem:[#allocation8 + $0x8] sm:$0xff]   ;;  %v796_v34 = vand.u32 127, %v423_v31  ;;  %vm1443_vm1 = vmmov 0  }
  0xbf   : > { %516 = vmatpush1.bf16.msra.mxu0 %v1161_v5  ;;  %v404_v19 = vpack.c.bf16 %v403_v18, %v403_v18  ;;  %1027 = vmatprep.subr.bf16.mxu1 %v1442_v21  ;;  %v1181_v22 = vld [vmem:[#allocation10] sm:$0xff]   ;;  %v1183_v24 = vld [vmem:[#allocation10 + $0x8] sm:$0xff]   ;;  %v1184_v25 = vld [vmem:[#allocation8 + $0x10] sm:$0xff]   ;;  %v424_v44 = vshrl.u32 %v423_v31, 7  ;;  %s1006_s4 = sshll.u32 %s1511_s9, 7  ;;  %s400_s25 = scalar_lea.vmem [#allocation11], %s1709_s17 }
  0xc0   : > { %517 = vmatprep.subr.bf16.mxu0 %v1162_v6  ;;  %1028 = vmatpush3.bf16.msra.mxu1 %v1180_v20  ;;  %v1185_v26 = vld [vmem:[#allocation10 + $0x10] sm:$0xff]   ;;  %v1186_v27 = vld [vmem:[#allocation8 + $0x18] sm:$0xff]   ;;  %v1188_v29 = vld [vmem:[#allocation8 + $0x20] sm:$0xff]   ;;  %vm797_vm0 = vcmp.lt.s32.totalorder %v796_v34, 16  ;;  %s831_s12 = sshll.u32 %s400_s25, 4  ;;  %s1751_s14 = scalar_lea.hbm %s1803_s8, %s1006_s4  ;;  %s1753_s12 = int_to_ptr.vmem [resolvable:$true] %s831_s12 }
  0xc1   : > { %1029 = vmatprep.subr.bf16.mxu1 %v1442_v21  ;;  %v1187_v28 = vld [vmem:[#allocation10 + $0x18] sm:$0xff]   ;;  %v1189_v30 = vld [vmem:[#allocation10 + $0x20] sm:$0xff]   ;;  %v1190_v32 = vld [vmem:[#allocation8 + $0x28] sm:$0xff]   ;;  %1043 = vmatprep.mubr.msk.bf16.mxu1 %vm1443_vm1, %v1442_v21  ;;  %v425_v45 = vsub.s32 0, %v424_v44  ;;  %v429_v47 = vsub.s32 1, %v424_v44  ;;  %s818_s21 = scalar_lea.sflag [#allocation4], %s1706_s6 }
  0xc2   : > { %v1191_v33 = vld [vmem:[#allocation10 + $0x28] sm:$0xff]   ;;  %v1192_v36 = vld [vmem:[#allocation8 + $0x30] sm:$0xff]   ;;  %v1194_v40 = vld [vmem:[#allocation8 + $0x38] sm:$0xff]   ;;  %s1352_s9 = scalar_lea.vmem %s1753_s12, 128  ;;  %p1832_p2 = scmp.ne.s32.totalorder %s1824_s24, 0 }
  0xc3   : > { %518 = vmatpush1.bf16.msra.mxu0 %v1164_v7  ;;  %v1193_v38 = vld [vmem:[#allocation10 + $0x30] sm:$0xff]   ;;  %v1195_v42 = vld [vmem:[#allocation10 + $0x38] sm:$0xff]   ;;  %v421_v46 = vld [vmem:[%s1798_s3] sm:$0x3]  ;;  %p1353_p12 = scmp.ne.s32.totalorder %s1753_s12, %s1352_s9  ;;  %s1444_s17 = smov [#allocation11]  }
  0xc4   : > { %519 = vmatprep.subr.bf16.mxu0 %v1165_v8  ;;  %1030 = vmatpush3.bf16.msra.mxu1 %v1182_v23  ;;  %v426_v48 = vrot.slane %v421_v46, %v425_v45  ;;  %v430_v49 = vrot.slane %v421_v46, %v429_v47  ;;  %s1356_s13 = sshll.u32 %s1444_s17, 4  ;;  %s1357_s13 = int_to_ptr.vmem [resolvable:$false] %s1356_s13 }
  0xc5   : > { %1031 = vmatprep.subr.bf16.mxu1 %v1442_v21  ;;  %p1354_p1 = pnand %p1353_p12, %p1832_p2  ;;  %s1358_s15 = scalar_lea.vmem %s1357_s13, 256 }
  0xc6   : > { %p1359_p0 = scmp.lt.s32.totalorder %s1753_s12, %s1357_s13  ;;  %p1360_p8 = scmp.lt.s32.totalorder %s1358_s15, %s1352_s9 }
  0xc7   : > { %520 = vmatpush1.bf16.msra.mxu0 %v1167_v9  ;;  %p1355_p4 = pneg %p1354_p1 }
  0xc8   : > { %521 = vmatprep.subr.bf16.mxu0 %v1168_v10  ;;  %1032 = vmatpush3.bf16.msra.mxu1 %v1184_v25  ;;  %p1361_p6 = por %p1360_p8, %p1359_p0 }
  0xc9   : > { %1033 = vmatprep.subr.bf16.mxu1 %v1442_v21 }
  0xca   : > { %p1362_p10 = pnand %p1361_p6, %p1355_p4 }
  0xcb   : > { %522 = vmatpush1.bf16.msra.mxu0 %v1170_v11 }
  0xcc   : > { %523 = vmatprep.subr.bf16.mxu0 %v1171_v12  ;;  %1034 = vmatpush3.bf16.msra.mxu1 %v1186_v27 }
  0xcd   : > { %1035 = vmatprep.subr.bf16.mxu1 %v1442_v21 }
  0xcf   : > { %524 = vmatpush1.bf16.msra.mxu0 %v1173_v13  ;;  %v987_v13 = vld [vmem:[%s1800_s5] ss:$0 sm:$0xff] }
  0xd0   : > { %525 = vmatprep.subr.bf16.mxu0 %v1174_v14  ;;  %1036 = vmatpush3.bf16.msra.mxu1 %v1188_v29  ;;  %v996_v14 = vld [vmem:[%s1802_s7] ss:$0 sm:$0xff] }
  0xd1   : > { %1037 = vmatprep.subr.bf16.mxu1 %v1442_v21 }
  0xd3   : > { %526 = vmatpush1.bf16.msra.mxu0 %v1176_v15 }
  0xd4   : > { %527 = vmatprep.subr.bf16.mxu0 %v1177_v16  ;;  %1038 = vmatpush3.bf16.msra.mxu1 %v1190_v32 }
  0xd5   : > { %1039 = vmatprep.subr.bf16.mxu1 %v1442_v21 }
  0xd7   : > { %528 = vmatpush1.bf16.msra.mxu0 %v1179_v17 }
  0xd8   : > { %1047 = vmatprep.subr.bf16.mxu0 %v1442_v21  ;;  %1040 = vmatpush3.bf16.msra.mxu1 %v1192_v36 }
  0xd9   : > { %1041 = vmatprep.subr.bf16.mxu1 %v1442_v21 }
  0xda   : > { %546 = vmatmul.mubr.bf16.vlgmr.msra.gmra.mrb[0].mxu0 %v404_v19 }
  0xdb   : > { %1048 = vmatpush3.bf16.msra.mxu0 %v1181_v22  ;;  %1063 = vmatprep.mubr.msk.bf16.mxu0 %vm1443_vm1, %v1442_v21 }
  0xdc   : > { %1049 = vmatprep.subr.bf16.mxu0 %v1442_v21  ;;  %1042 = vmatpush3.bf16.msra.mxu1 %v1194_v40 }
  0xdf   : > { %1050 = vmatpush3.bf16.msra.mxu0 %v1183_v24 }
  0xe0   : > { %1051 = vmatprep.subr.bf16.mxu0 %v1442_v21 }
  0xe3   : > { %1052 = vmatpush3.bf16.msra.mxu0 %v1185_v26 }
  0xe4   : > { %1053 = vmatprep.subr.bf16.mxu0 %v1442_v21 }
  0xe7   : > { %1054 = vmatpush3.bf16.msra.mxu0 %v1187_v28 }
  0xe8   : > { %1055 = vmatprep.subr.bf16.mxu0 %v1442_v21 }
  0xeb   : > { %1056 = vmatpush3.bf16.msra.mxu0 %v1189_v30 }
  0xec   : > { %1057 = vmatprep.subr.bf16.mxu0 %v1442_v21 }
  0xef   : > { %1058 = vmatpush3.bf16.msra.mxu0 %v1191_v33 }
  0xf0   : > { %1059 = vmatprep.subr.bf16.mxu0 %v1442_v21 }
  0xf3   : > { %1060 = vmatpush3.bf16.msra.mxu0 %v1193_v38 }
  0xf4   : > { %1061 = vmatprep.subr.bf16.mxu0 %v1442_v21 }
  0xf7   : > { %1062 = vmatpush3.bf16.msra.mxu0 %v1195_v42 }
 0x146   : > { %v793_v35 = vpop.xlane.xlu0 %792 }
 0x147   : > { %v794_v37 = vmul.f32 0.0625, %v793_v35 }
 0x149   : > { %v798_v39 = vsub.f32 %v1731_v1, %v794_v37 }
 0x14b   : > { %v799_v41 = vsel %vm797_vm0, %v798_v39, 0.0 }
 0x14c   : > { %v800_v43 = vmul.f32 %v799_v41, %v799_v41 }
 0x14e   : > { %801 = vadd.xlane.f32.xlu0 %v800_v43 }
 0x1ad   : > { %v547_v50 = vpop.f32.mrb[0].mxu0 }
 0x1ae   : > { %v548_v51 = vadd.f32 %v547_v50, %v426_v48  ;;  %v549_v52 = vpop.f32.mrb[1].mxu0 }
 0x1af   : > { %v550_v53 = vadd.f32 %v549_v52, %v430_v49  ;;  %v551_v54 = vpop.f32.mrb[2].mxu0 }
 0x1b0   : > { %v985_v55 = vmul.f32 -1.442695, %v548_v51  ;;  %v552_v56 = vpop.f32.mrb[3].mxu0 }
 0x1b1   : > { %v986_v57 = vmul.f32 -1.442695, %v550_v53 }
 0x1b2   : > { %1196 = vpow2.f32 %v985_v55 }
 0x1b3   : > { %1198 = vpow2.f32 %v986_v57 }
 0x1bc   : > { %v1197_v58 = vpop.eup %1196 }
 0x1bd   : > { %v1199_v59 = vpop.eup %1198  ;;  %v560_v60 = vadd.f32 1.0, %v1197_v58 }
 0x1be   : > { %v561_v61 = vadd.f32 1.0, %v1199_v59 }
 0x1bf   : > { %1200 = vrcp.f32 %v560_v60 }
 0x1c0   : > { %1202 = vrcp.f32 %v561_v61 }
 0x1c9   : > { %v1201_v62 = vpop.eup %1200 }
 0x1ca   : > { %v1203_v63 = vpop.eup %1202  ;;  %v566_v0 = vmul.f32 %v1201_v62, %v548_v51 }
 0x1cb   : > { %v567_v1 = vmul.f32 %v1203_v63, %v550_v53 }
 0x1cc   : > { %v568_v2 = vpack.c.bf16 %v566_v0, %v566_v0 }
 0x1cd   : > { %v569_v3 = vpack.c.bf16 %v567_v1, %v567_v1 }
 0x1ce   : > { %1044 = vmatmul.mubr.bf16.vlgmr.msra.gmra.mrb[0].mxu1 %v568_v2 }
 0x1cf   : > { %1064 = vmatmul.mubr.bf16.vlgmr.msra.gmra.mrb[4].mxu0 %v569_v3 }
 0x1db   : > { %v802_v4 = vpop.xlane.xlu0 %801 }
 0x1dc   : > { %v803_v5 = vmul.f32 0.06666667, %v802_v4 }
 0x1de   : > { %1204 = vrsqrt.f32 %v803_v5  ;;  %vm806_vm2 = vcmp.eq.f32.partialorder %v803_v5, inf  ;;  %v809_v8 = vand.u32 2147483648, %v803_v5  ;;  %vm808_vm3 = vcmp.eq.f32.partialorder %v803_v5, 0.0 }
 0x1e8   : > { %v1205_v6 = vpop.eup %1204 }
 0x1e9   : > { %v805_v7 = vmul.f32 %v1205_v6, %v803_v5 }
 0x1eb   : > { %v807_v9 = vsel %vm806_vm2, %v803_v5, %v805_v7 }
 0x1ec   : > { %v810_v10 = vsel %vm808_vm3, %v809_v8, %v807_v9 }
 0x1ed   : > { %v811_v11 = vadd.f32 1e-06, %v810_v10 }
 0x1ef   : > { %1206 = vrcp.f32 %v811_v11 }
 0x1f9   : > { %v1207_v12 = vpop.eup %1206 }
 0x1fa   : > { %v813_v17 = vmul.f32 %v1207_v12, %v799_v41 }
 0x2a1   : > { %v675_v15 = vpop.f32.mrb[0].mxu1 }
 0x2a2   : > { %v676_v16 = vadd.f32 %v987_v13, %v675_v15  ;;  %v1045_v18 = vpop.f32.mrb[1].mxu1  ;;  %v786_v19 = vpop.f32.mrb[4].mxu0 }
 0x2a3   : > { %v787_v20 = vadd.f32 %v996_v14, %v786_v19  ;;  %v678_v21 = vpop.f32.mrb[2].mxu1  ;;  %v1065_v22 = vpop.f32.mrb[5].mxu0 }
 0x2a4   : > { %v814_v23 = vmul.f32 %v813_v17, %v676_v16  ;;  %v1046_v24 = vpop.f32.mrb[3].mxu1  ;;  %v789_v25 = vpop.f32.mrb[6].mxu0 }
 0x2a5   : > { %v1066_v26 = vpop.f32.mrb[7].mxu0 }
 0x2a6   : > { %v815_v27 = vadd.f32 %v814_v23, %v787_v20 }
 0x2a8   : > { %816 = vst [vmem:[%s400_s25] sm:$0xff] %v815_v27 }
 0x2a9   : > { %1365 = shalt.err (!%p1362_p10)
}
 0x2aa   : > { %s1366_s6 = scalar_lea.hbm %s1751_s14, 128  ;;  %s1370_s27 = scalar_lea.hbm %s1803_s8, 256 }
 0x2ab   : > { %p1367_p13 = scmp.ne.s32.totalorder %s1751_s14, %s1366_s6  ;;  %p1371_p9 = scmp.lt.u32.totalorder %s1751_s14, %s1803_s8 }
 0x2ac   : > { %p1372_p3 = scmp.lt.u32.totalorder %s1370_s27, %s1366_s6  ;;  %p1374_p12 = scmp.lt.u32.totalorder %s1366_s6, %s1751_s14 }
 0x2ad   : > { %p1368_p5 = pnand %p1367_p13, %p1832_p2 }
 0x2ae   : > { %p1373_p7 = por %p1372_p3, %p1371_p9 }
 0x2af   : > { %p1369_p11 = pneg %p1368_p5 }
 0x2b0   : > { %p1375_p1 = por %p1374_p12, %p1373_p7 }
 0x2b2   : > { %p1376_p4 = pnand %p1375_p1, %p1369_p11 }
 0x2b4   : > { %1379 = shalt.err (!%p1376_p4)
}
 0x2b5   : > { %1083 = dma.vmem_to_hbm [thread:$0]  (%p1832_p2), %s1753_s12, 128, %s1751_s14, %s818_s21  }
 0x2b6 PF: > { %s1833_s23 = sld [smem:[#allocation17_spill]]  ;;  %s1834_s18 = sld [smem:[#allocation18_spill]] }
 0x2b7   : > { %p1836_p8 = scmp.ge.s32.totalorder %s1430_s30, 2 }
 0x2bc   : > { %s843_s4 = sand.u32 1, %s1833_s23   ;;  %p1835_p0 = scmp.ne.s32.totalorder %s1834_s18, 0 }
 0x2bd   : > { %s844_s25 = scalar_lea.sflag [#allocation4], %s843_s4 }
 0x2be   : > { %p1103_p6 = pnand %p1836_p8, %p1835_p0 }
 0x2c0   : > { %1413 = dma.done.wait (!%p1103_p6), %s844_s25, 128  }
 0x2c1   : > { %1415 = vsyncadd (!%p1103_p6), %s844_s25, 4294967168  ;;  %p25_p10 = scmp.ge.s32.totalorder %s1600_s22, 4   ;;  %s1837_s27 = smov %s1422_s28 }
 0x2c2   : > { %s1838_s28 = smov %s1426_s29  ;;  %s1839_s29 = smov %s1628_s16 }
 0x2c3   : > { %s1840_s30 = smov %s1600_s22  ;;  %27 = sbr.rel (!%p25_p10) target bundleno = 12 (0xc), region = 122 }
 0x2ca   :  { %849 = vsyncpa [#allocation3], 1 }
 0x2cb   :  { %851 = vsyncpa [#allocation3 + $0x1], 1 }
 0x2cc   :  { %852 = vsyncpa [#allocation6], 1 }
 0x2cd   :  { %854 = vsyncpa [#allocation6 + $0x1], 1 }
 0x2ce   :  { %855 = vsyncpa [#allocation9], 1 }
 0x2cf   :  { %856 = vsyncpa [#allocation4], 1 }
 0x2d0   :  { %858 = vsyncpa [#allocation4 + $0x1], 1 }

</bundles_post_ra>
